<compile_context>
chip_gen: v7x
topology: tpu7x:2x2x1
jax: 0.10.0
libtpu: 0.0.40
codegen_flags: <defaults>
</compile_context>

<pallas_src>
import functools

import jax
import jax.numpy as jnp
from jax import lax
from jax.experimental import pallas as pl
from jax.experimental.pallas import tpu as pltpu

_BN_EPS = 1e-5
_MIN_PALLAS_LANES = 512          # levels with H*W below this run on the XLA path
_CONV1X1_VMEM_BUDGET = 8 << 20   # conservative: fits v7x 32 MiB / v5e 16 MiB scoped VMEM


def _round_up(x, m):
    return ((x + m - 1) // m) * m


def _pick_col_tile(L, cin, cout, n_batch, min_grid_steps=4):
    """Column (lane) tile for the 1x1 conv.

    Largest multiple-of-128 divisor of L such that (a) the double-buffered bf16
    in/out blocks stay inside a conservative VMEM budget (v7x-safe) and (b) the
    (n_batch, L // TL) grid has >= min_grid_steps steps so BlockSpec
    double-buffering actually overlaps DMA with compute.
    """
    divs = [t for t in range(128, L, 128) if L % t == 0]
    if not divs:
        return L                                     # no 128-divisor: one full block
    bytes_per_lane = 2 * 2 * cin + 2 * 2 * cout      # dbl-buffered bf16 in + bf16 out
    cap = max(128, (_CONV1X1_VMEM_BUDGET // bytes_per_lane) // 128 * 128)
    want_tiles = max(1, -(-min_grid_steps // max(n_batch, 1)))
    cands = divs + [L]
    good = [t for t in cands if t <= cap and (L // t) >= want_tiles]
    if good:
        return max(good)
    good = [t for t in cands if t <= cap]
    return max(good) if good else min(divs)


# ---------------------------------------------------------------------------
# Kernel 1: fused 1x1 conv + folded BN + LeakyReLU  (channels-first, lane-dense)
#   out[co, p] = leaky( (sum_ci w[co,ci] * x[ci,p]) * scale[co] + bias[co] )
# Output is bf16 (it is only ever an intermediate lateral map).
# ---------------------------------------------------------------------------
def _conv1x1_bn_leaky_kernel(x_ref, w_ref, scale_ref, bias_ref, o_ref, *, leaky):
    # x_ref: (1, Cin, TL) bf16 ; w_ref: (Cout, Cin) bf16 ; f32 MXU accumulation.
    acc = jnp.dot(w_ref[...], x_ref[0], preferred_element_type=jnp.float32)
    y = acc * scale_ref[...] + bias_ref[...]            # (Cout, 1) broadcast over lanes
    o_ref[0] = jnp.where(y >= 0.0, y, leaky * y).astype(o_ref.dtype)


def conv1x1_bn_leaky(x_nchw, w, scale, bias, leaky, use_pallas=True):
    """x: (N, Cin, H, W), w: (Cin, Cout) -> (N, Cout, H, W) bf16 lateral."""
    N, Cin, H, W = x_nchw.shape
    Cout = w.shape[1]
    L = H * W
    xb = x_nchw.astype(jnp.bfloat16)
    wt = w.T.astype(jnp.bfloat16)                        # (Cout, Cin)

    if (not use_pallas) or (L < _MIN_PALLAS_LANES):
        # Tiny levels: Pallas launch + per-step overhead would dominate.
        y = jnp.einsum('oc,nchw->nohw', wt, xb, preferred_element_type=jnp.float32)
        y = y * scale[None, :, None, None] + bias[None, :, None, None]
        return jnp.where(y >= 0.0, y, leaky * y).astype(jnp.bfloat16)

    TL = _pick_col_tile(L, Cin, Cout, N)
    x3 = xb.reshape(N, Cin, L)                           # free reshape, stays NC(HW)
    scale2 = scale.reshape(Cout, 1).astype(jnp.float32)
    bias2 = bias.reshape(Cout, 1).astype(jnp.float32)

    out = pl.pallas_call(
        functools.partial(_conv1x1_bn_leaky_kernel, leaky=leaky),
        out_shape=jax.ShapeDtypeStruct((N, Cout, L), jnp.bfloat16),
        grid_spec=pltpu.PrefetchScalarGridSpec(
            num_scalar_prefetch=0,
            grid=(N, L // TL),                           # >=4 steps at demo sizes
            in_specs=[
                pl.BlockSpec((1, Cin, TL), lambda n, t: (n, 0, t)),
                pl.BlockSpec((Cout, Cin), lambda n, t: (0, 0)),
                pl.BlockSpec((Cout, 1), lambda n, t: (0, 0)),
                pl.BlockSpec((Cout, 1), lambda n, t: (0, 0)),
            ],
            out_specs=pl.BlockSpec((1, Cout, TL), lambda n, t: (n, 0, t)),
        ),
        compiler_params=pltpu.CompilerParams(
            dimension_semantics=("parallel", "parallel")),
    )(x3, wt, scale2, bias2)
    return out.reshape(N, Cout, H, W)


# ---------------------------------------------------------------------------
# Kernel 2: fused [residual add] + 3x3 conv (pad=1) + folded BN + LeakyReLU on
#           pre-padded, spatially-flattened bf16 inputs (channels-first).
#   The padded image is flattened to (Cin, (H+2)*(W+2)); tap (dy,dx) is a single
#   contiguous lane slice at offset dy*(W+2)+dx of length H*(W+2) ("wide" rows).
#   9 accumulating thin-K MXU matmuls (no im2col scratch), then compact per-row
#   stores drop the 2 junk columns per row directly into the (Cout, H*W) output.
# ---------------------------------------------------------------------------
def _conv3x3_bn_leaky_kernel(*refs, leaky, H, W, Wp, fuse_add):
    if fuse_add:
        a_ref, b_ref, w_ref, scale_ref, bias_ref, o_ref = refs
        xp = a_ref[0] + b_ref[0]                         # fused residual merge (bf16 VPU add)
    else:
        a_ref, w_ref, scale_ref, bias_ref, o_ref = refs
        xp = a_ref[0]                                    # (Cin, LP) bf16
    Lw = H * Wp

    # 9 accumulating K=Cin matmuls on lane-shifted tap slices; MXU is idle in this
    # memory-bound kernel so the thin matmuls are free and no scratch fill is needed.
    acc = jnp.dot(w_ref[0], xp[:, 0:Lw], preferred_element_type=jnp.float32)
    for k in range(1, 9):
        dy, dx = divmod(k, 3)
        off = dy * Wp + dx
        acc = acc + jnp.dot(w_ref[k], xp[:, off:off + Lw],
                            preferred_element_type=jnp.float32)

    y = acc * scale_ref[...] + bias_ref[...]
    y = jnp.where(y >= 0.0, y, leaky * y)

    # Compact per-row stores: drop the 2 junk columns of every wide row in-kernel,
    # so no post-kernel wide->narrow slice pass (extra HBM read+write) is needed.
    # TODO(synk): for large H, switch to halo'd row-slab grid tiling (also needed
    # so whole-image blocks fit v7x's 64 MiB VMEM at realistic FPN map sizes).
    for r in range(H):
        o_ref[0, :, r * W:(r + 1) * W] = y[:, r * Wp:r * Wp + W].astype(o_ref.dtype)


def conv3x3_bn_leaky(x_nchw, up_nchw, w3, scale, bias, leaky, use_pallas=True):
    """x, up: (N, C, H, W) (up may be None); w3: (3, 3, Cin, Cout) HWIO -> f32 NCHW."""
    N, Cin, H, W = x_nchw.shape
    Cout = w3.shape[-1]
    xb = x_nchw.astype(jnp.bfloat16)
    ub = None if up_nchw is None else up_nchw.astype(jnp.bfloat16)
    wb = w3.astype(jnp.bfloat16)

    if (not use_pallas) or (H * W < _MIN_PALLAS_LANES):  # tiny levels: XLA path
        xm = xb if ub is None else (xb + ub)
        y = lax.conv_general_dilated(
            xm, wb, window_strides=(1, 1), padding='SAME',
            dimension_numbers=('NCHW', 'HWIO', 'NCHW'),
            preferred_element_type=jnp.float32)
        y = y * scale[None, :, None, None] + bias[None, :, None, None]
        return jnp.where(y >= 0.0, y, leaky * y)

    Hp, Wp = H + 2, W + 2
    LP = _round_up(Hp * Wp + 2, 128)                     # keeps all tap slices in-bounds

    # zero-pad 1px border + flatten + lane-pad (cheap bf16 XLA producer).
    # TODO(synk): fuse nearest-upsample + border padding into the kernel (needs a
    # lane-interleaving 2x expansion in the flattened layout).
    def pad_flat(a):
        ap = jnp.pad(a, ((0, 0), (0, 0), (1, 1), (1, 1)))
        flat = ap.reshape(N, Cin, Hp * Wp)
        return jnp.pad(flat, ((0, 0), (0, 0), (0, LP - Hp * Wp)))

    inputs = [pad_flat(xb)] + ([] if ub is None else [pad_flat(ub)])
    w9 = wb.reshape(9, Cin, Cout).transpose(0, 2, 1)     # (9, Cout, Cin), k = dy*3+dx
    scale2 = scale.reshape(Cout, 1).astype(jnp.float32)
    bias2 = bias.reshape(Cout, 1).astype(jnp.float32)

    in_specs = ([pl.BlockSpec((1, Cin, LP), lambda n: (n, 0, 0))] * len(inputs)
                + [pl.BlockSpec((9, Cout, Cin), lambda n: (0, 0, 0)),
                   pl.BlockSpec((Cout, 1), lambda n: (0, 0)),
                   pl.BlockSpec((Cout, 1), lambda n: (0, 0))])

    out = pl.pallas_call(
        functools.partial(_conv3x3_bn_leaky_kernel, leaky=leaky, H=H, W=W, Wp=Wp,
                          fuse_add=(ub is not None)),
        out_shape=jax.ShapeDtypeStruct((N, Cout, H * W), jnp.float32),
        grid_spec=pltpu.PrefetchScalarGridSpec(
            num_scalar_prefetch=0,
            grid=(N,),
            in_specs=in_specs,
            out_specs=pl.BlockSpec((1, Cout, H * W), lambda n: (n, 0, 0)),
        ),
        compiler_params=pltpu.CompilerParams(dimension_semantics=("parallel",)),
    )(*inputs, w9, scale2, bias2)
    return out.reshape(N, Cout, H, W)                    # already compact NCHW, no slice pass


# ---------------------------------------------------------------------------
# Plain-JAX glue
# ---------------------------------------------------------------------------
def nearest_upsample(x_nchw, out_h, out_w):
    # F.interpolate(mode='nearest'): pure index gather, kept as XLA glue.
    N, C, H, W = x_nchw.shape
    idx_h = (jnp.arange(out_h) * H) // out_h
    idx_w = (jnp.arange(out_w) * W) // out_w
    return x_nchw[:, :, idx_h][:, :, :, idx_w]


def _fold_bn(gamma, beta, mean, var, eps=_BN_EPS):
    scale = gamma / jnp.sqrt(var + eps)
    bias = beta - mean * scale
    return scale, bias


def synthetic_backbone(x_nchw, in_channels_list, key):
    # Deterministic synthetic backbone (glue, not part of FPN compute):
    # strided subsampling + 1x1 channel projection, NCHW maps at strides 2,4,8.
    feats = []
    cin = x_nchw.shape[1]
    for i, cout in enumerate(in_channels_list):
        key, k = jax.random.split(key)
        stride = 2 ** (i + 1)
        sub = x_nchw[:, :, ::stride, ::stride]
        wproj = jax.random.normal(k, (cout, cin), jnp.float32) * 0.2
        feats.append(jnp.einsum('nchw,oc->nohw', sub, wproj))
    return feats


def init_fpn_params(key, in_channels_list, out_channels):
    params = {'pre': [], 'post': []}
    for cin in in_channels_list:
        key, k1, k2, k3, k4, k5 = jax.random.split(key, 6)
        w = jax.random.normal(k1, (cin, out_channels), jnp.float32) * 0.1
        gamma = 1.0 + 0.1 * jax.random.normal(k2, (out_channels,), jnp.float32)
        beta = 0.1 * jax.random.normal(k3, (out_channels,), jnp.float32)
        mean = 0.1 * jax.random.normal(k4, (out_channels,), jnp.float32)
        var = jax.random.uniform(k5, (out_channels,), jnp.float32, 0.5, 1.5)
        params['pre'].append((w,) + _fold_bn(gamma, beta, mean, var))
    for _ in in_channels_list:
        key, k1, k2, k3, k4, k5 = jax.random.split(key, 6)
        w = jax.random.normal(k1, (3, 3, out_channels, out_channels), jnp.float32) * 0.05
        gamma = 1.0 + 0.1 * jax.random.normal(k2, (out_channels,), jnp.float32)
        beta = 0.1 * jax.random.normal(k3, (out_channels,), jnp.float32)
        mean = 0.1 * jax.random.normal(k4, (out_channels,), jnp.float32)
        var = jax.random.uniform(k5, (out_channels,), jnp.float32, 0.5, 1.5)
        params['post'].append((w,) + _fold_bn(gamma, beta, mean, var))
    return params


def fpn_forward(x_nchw, params, backbone_key, *, in_channels_list, out_channels,
                use_pallas=True):
    # LeakyReLU(negative_slope=0) == ReLU, matching the PyTorch helper for >64 ch.
    leaky = 0.1 if out_channels <= 64 else 0.0
    feats = synthetic_backbone(x_nchw, in_channels_list, backbone_key)        # NCHW f32
    laterals = [conv1x1_bn_leaky(f, *p, leaky, use_pallas)
                for f, p in zip(feats, params['pre'])]                        # bf16 NCHW
    smallest = conv3x3_bn_leaky(laterals[-1], None, *params['post'][-1], leaky, use_pallas)
    outs = []
    # Matches the PyTorch code exactly: merges are between *adjacent laterals*
    # (zip of the pre-merge list), not cascaded. The `big + up` add is fused
    # into the 3x3 kernel (both operands passed separately, added in-kernel).
    for big, small, p in zip(laterals[:-1], laterals[1:], params['post'][:-1]):
        up = nearest_upsample(small, big.shape[2], big.shape[3])
        outs.append(conv3x3_bn_leaky(big, up, *p, leaky, use_pallas))
    outs.append(smallest)
    return outs                                           # list of NCHW f32 maps


# ---------------------------------------------------------------------------
if __name__ == "__main__":
    key = jax.random.PRNGKey(0)
    kx, kb, kp = jax.random.split(key, 3)

    in_channels_list = (8, 16, 32)
    out_channels = 16                                     # <= 64 -> LeakyReLU(0.1)

    # NCHW input (matches the PyTorch module's input convention)
    x = jax.random.normal(kx, (2, 3, 64, 64), jnp.float32)
    params = init_fpn_params(kp, in_channels_list, out_channels)

    fwd = jax.jit(functools.partial(
        fpn_forward, in_channels_list=in_channels_list,
        out_channels=out_channels, use_pallas=True))
    ref_fwd = jax.jit(functools.partial(
        fpn_forward, in_channels_list=in_channels_list,
        out_channels=out_channels, use_pallas=False))

    outs = [jax.block_until_ready(o) for o in fwd(x, params, kb)]
    refs = [jax.block_until_ready(r) for r in ref_fwd(x, params, kb)]

    assert len(outs) == len(in_channels_list)
    for o, r in zip(outs, refs):
        assert o.shape == r.shape and o.dtype == r.dtype
        err = float(jnp.max(jnp.abs(o - r)))
        # bf16 laterals / bf16 merge set the error floor (~1 bf16 ulp propagated
        # through one 3x3 conv); 4e-3 still catches any real tap/offset bug.
        assert err < 4e-3, f"mismatch: max abs err = {err}"

    print("KERNEL_OK")
</pallas_src>

<mosaic_0001>
module attributes {stable_mosaic.version = 11 : i64} {
  func.func @_conv1x1_bn_leaky_kernel(%arg0: i32, %arg1: i32, %arg2: memref<1x8x512xbf16, #tpu.memory_space<vmem>>, %arg3: memref<16x8xbf16, #tpu.memory_space<vmem>>, %arg4: memref<16x1xf32, #tpu.memory_space<vmem>>, %arg5: memref<16x1xf32, #tpu.memory_space<vmem>>, %arg6: memref<1x16x512xbf16, #tpu.memory_space<vmem>>) attributes {dimension_semantics = [#tpu.dimension_semantics<parallel>, #tpu.dimension_semantics<parallel>], iteration_bounds = array<i64: 2, 2>, scalar_prefetch = 0 : i64, scratch_operands = 0 : i64, tpu.core_type = #tpu.core_type<tc>, window_params = [{transform_indices = @transform_0, window_bounds = array<i64: 1, 8, 512>}, {pipeline_mode = #tpu.pipeline_mode<synchronous>, transform_indices = @transform_1, window_bounds = array<i64: 16, 8>}, {pipeline_mode = #tpu.pipeline_mode<synchronous>, transform_indices = @transform_2, window_bounds = array<i64: 16, 1>}, {pipeline_mode = #tpu.pipeline_mode<synchronous>, transform_indices = @transform_3, window_bounds = array<i64: 16, 1>}, {transform_indices = @transform_4, window_bounds = array<i64: 1, 16, 512>}]} {
    %c0 = arith.constant 0 : index
    %c0_0 = arith.constant 0 : index
    %0 = vector.load %arg3[%c0, %c0_0] : memref<16x8xbf16, #tpu.memory_space<vmem>>, vector<16x8xbf16>
    %c0_1 = arith.constant 0 : index
    %c0_2 = arith.constant 0 : index
    %c0_3 = arith.constant 0 : index
    %1 = vector.load %arg2[%c0_1, %c0_2, %c0_3] : memref<1x8x512xbf16, #tpu.memory_space<vmem>>, vector<1x8x512xbf16>
    %2 = vector.shape_cast %1 : vector<1x8x512xbf16> to vector<8x512xbf16>
    %cst = arith.constant dense<0.000000e+00> : vector<16x512xf32>
    %3 = tpu.matmul %0, %2, %cst {dimension_numbers = #tpu.dot_dimension_numbers<[1], [0], [0], [1], [0, 0, 1, 1], [], []>} : vector<16x8xbf16>, vector<8x512xbf16>, vector<16x512xf32> -> vector<16x512xf32>
    %c0_4 = arith.constant 0 : index
    %c0_5 = arith.constant 0 : index
    %4 = vector.load %arg4[%c0_4, %c0_5] : memref<16x1xf32, #tpu.memory_space<vmem>>, vector<16x1xf32>
    %5 = vector.broadcast %4 : vector<16x1xf32> to vector<16x512xf32>
    %6 = arith.mulf %3, %5 : vector<16x512xf32>
    %c0_6 = arith.constant 0 : index
    %c0_7 = arith.constant 0 : index
    %7 = vector.load %arg5[%c0_6, %c0_7] : memref<16x1xf32, #tpu.memory_space<vmem>>, vector<16x1xf32>
    %8 = vector.broadcast %7 : vector<16x1xf32> to vector<16x512xf32>
    %9 = arith.addf %6, %8 : vector<16x512xf32>
    %cst_8 = arith.constant 0.000000e+00 : f32
    %10 = vector.broadcast %cst_8 : f32 to vector<16x512xf32>
    %11 = arith.cmpf oge, %9, %10 : vector<16x512xf32>
    %cst_9 = arith.constant 1.000000e-01 : f32
    %12 = vector.broadcast %cst_9 : f32 to vector<16x512xf32>
    %13 = arith.mulf %12, %9 : vector<16x512xf32>
    %14 = arith.select %11, %9, %13 : vector<16x512xi1>, vector<16x512xf32>
    %15 = arith.truncf %14 : vector<16x512xf32> to vector<16x512xbf16>
    %c0_10 = arith.constant 0 : index
    %c0_11 = arith.constant 0 : index
    %c0_12 = arith.constant 0 : index
    %16 = vector.load %arg6[%c0_10, %c0_11, %c0_12] : memref<1x16x512xbf16, #tpu.memory_space<vmem>>, vector<1x16x512xbf16>
    %17 = vector.shape_cast %16 : vector<1x16x512xbf16> to vector<16x512xbf16>
    %18 = vector.shape_cast %15 : vector<16x512xbf16> to vector<1x16x512xbf16>
    tpu.vector_store %arg6[%c0_10, %c0_11, %c0_12], %18 {strides = array<i32>} : memref<1x16x512xbf16, #tpu.memory_space<vmem>>, vector<1x16x512xbf16>,
    return
  }
  func.func @transform_0(%arg0: i32, %arg1: i32) -> (i32, i32, i32) {
    %c0_i32 = arith.constant 0 : i32
    %c0_i32_0 = arith.constant 0 : i32
    return %arg0, %c0_i32, %arg1 : i32, i32, i32
  }
  func.func @transform_1(%arg0: i32, %arg1: i32) -> (i32, i32) {
    %c0_i32 = arith.constant 0 : i32
    %c0_i32_0 = arith.constant 0 : i32
    %c0_i32_1 = arith.constant 0 : i32
    return %c0_i32, %c0_i32_0 : i32, i32
  }
  func.func @transform_2(%arg0: i32, %arg1: i32) -> (i32, i32) {
    %c0_i32 = arith.constant 0 : i32
    %c0_i32_0 = arith.constant 0 : i32
    %c0_i32_1 = arith.constant 0 : i32
    return %c0_i32, %c0_i32_0 : i32, i32
  }
  func.func @transform_3(%arg0: i32, %arg1: i32) -> (i32, i32) {
    %c0_i32 = arith.constant 0 : i32
    %c0_i32_0 = arith.constant 0 : i32
    %c0_i32_1 = arith.constant 0 : i32
    return %c0_i32, %c0_i32_0 : i32, i32
  }
  func.func @transform_4(%arg0: i32, %arg1: i32) -> (i32, i32, i32) {
    %c0_i32 = arith.constant 0 : i32
    %c0_i32_0 = arith.constant 0 : i32
    return %arg0, %c0_i32, %arg1 : i32, i32, i32
  }
}

module attributes {stable_mosaic.version = 11 : i64} {
  func.func @_conv3x3_bn_leaky_kernel(%arg0: i32, %arg1: memref<1x16x1280xbf16, #tpu.memory_space<vmem>>, %arg2: memref<1x16x1280xbf16, #tpu.memory_space<vmem>>, %arg3: memref<9x16x16xbf16, #tpu.memory_space<vmem>>, %arg4: memref<16x1xf32, #tpu.memory_space<vmem>>, %arg5: memref<16x1xf32, #tpu.memory_space<vmem>>, %arg6: memref<1x16x1024xf32, #tpu.memory_space<vmem>>) attributes {dimension_semantics = [#tpu.dimension_semantics<parallel>], iteration_bounds = array<i64: 2>, scalar_prefetch = 0 : i64, scratch_operands = 0 : i64, tpu.core_type = #tpu.core_type<tc>, window_params = [{transform_indices = @transform_0, window_bounds = array<i64: 1, 16, 1280>}, {transform_indices = @transform_1, window_bounds = array<i64: 1, 16, 1280>}, {pipeline_mode = #tpu.pipeline_mode<synchronous>, transform_indices = @transform_2, window_bounds = array<i64: 9, 16, 16>}, {pipeline_mode = #tpu.pipeline_mode<synchronous>, transform_indices = @transform_3, window_bounds = array<i64: 16, 1>}, {pipeline_mode = #tpu.pipeline_mode<synchronous>, transform_indices = @transform_4, window_bounds = array<i64: 16, 1>}, {transform_indices = @transform_5, window_bounds = array<i64: 1, 16, 1024>}]} {
    %c0 = arith.constant 0 : index
    %c0_0 = arith.constant 0 : index
    %c0_1 = arith.constant 0 : index
    %0 = vector.load %arg1[%c0, %c0_0, %c0_1] : memref<1x16x1280xbf16, #tpu.memory_space<vmem>>, vector<1x16x1280xbf16>
    %1 = vector.shape_cast %0 : vector<1x16x1280xbf16> to vector<16x1280xbf16>
    %c0_2 = arith.constant 0 : index
    %c0_3 = arith.constant 0 : index
    %c0_4 = arith.constant 0 : index
    %2 = vector.load %arg2[%c0_2, %c0_3, %c0_4] : memref<1x16x1280xbf16, #tpu.memory_space<vmem>>, vector<1x16x1280xbf16>
    %3 = vector.shape_cast %2 : vector<1x16x1280xbf16> to vector<16x1280xbf16>
    %4 = arith.addf %1, %3 : vector<16x1280xbf16>
    %c0_5 = arith.constant 0 : index
    %c0_6 = arith.constant 0 : index
    %c0_7 = arith.constant 0 : index
    %5 = vector.load %arg3[%c0_5, %c0_6, %c0_7] : memref<9x16x16xbf16, #tpu.memory_space<vmem>>, vector<1x16x16xbf16>
    %6 = vector.shape_cast %5 : vector<1x16x16xbf16> to vector<16x16xbf16>
    %7 = vector.extract_strided_slice %4 {offsets = [0, 0], sizes = [16, 1088], strides = [1, 1]} : vector<16x1280xbf16> to vector<16x1088xbf16>
    %cst = arith.constant dense<0.000000e+00> : vector<16x1088xf32>
    %8 = tpu.matmul %6, %7, %cst {dimension_numbers = #tpu.dot_dimension_numbers<[1], [0], [0], [1], [0, 0, 1, 1], [], []>} : vector<16x16xbf16>, vector<16x1088xbf16>, vector<16x1088xf32> -> vector<16x1088xf32>
    %c1 = arith.constant 1 : index
    %c0_8 = arith.constant 0 : index
    %c0_9 = arith.constant 0 : index
    %9 = vector.load %arg3[%c1, %c0_8, %c0_9] : memref<9x16x16xbf16, #tpu.memory_space<vmem>>, vector<1x16x16xbf16>
    %10 = vector.shape_cast %9 : vector<1x16x16xbf16> to vector<16x16xbf16>
    %11 = vector.extract_strided_slice %4 {offsets = [0, 1], sizes = [16, 1088], strides = [1, 1]} : vector<16x1280xbf16> to vector<16x1088xbf16>
    %cst_10 = arith.constant dense<0.000000e+00> : vector<16x1088xf32>
    %12 = tpu.matmul %10, %11, %cst_10 {dimension_numbers = #tpu.dot_dimension_numbers<[1], [0], [0], [1], [0, 0, 1, 1], [], []>} : vector<16x16xbf16>, vector<16x1088xbf16>, vector<16x1088xf32> -> vector<16x1088xf32>
    %13 = arith.addf %8, %12 : vector<16x1088xf32>
    %c2 = arith.constant 2 : index
    %c0_11 = arith.constant 0 : index
    %c0_12 = arith.constant 0 : index
    %14 = vector.load %arg3[%c2, %c0_11, %c0_12] : memref<9x16x16xbf16, #tpu.memory_space<vmem>>, vector<1x16x16xbf16>
    %15 = vector.shape_cast %14 : vector<1x16x16xbf16> to vector<16x16xbf16>
    %16 = vector.extract_strided_slice %4 {offsets = [0, 2], sizes = [16, 1088], strides = [1, 1]} : vector<16x1280xbf16> to vector<16x1088xbf16>
    %cst_13 = arith.constant dense<0.000000e+00> : vector<16x1088xf32>
    %17 = tpu.matmul %15, %16, %cst_13 {dimension_numbers = #tpu.dot_dimension_numbers<[1], [0], [0], [1], [0, 0, 1, 1], [], []>} : vector<16x16xbf16>, vector<16x1088xbf16>, vector<16x1088xf32> -> vector<16x1088xf32>
    %18 = arith.addf %13, %17 : vector<16x1088xf32>
    %c3 = arith.constant 3 : index
    %c0_14 = arith.constant 0 : index
    %c0_15 = arith.constant 0 : index
    %19 = vector.load %arg3[%c3, %c0_14, %c0_15] : memref<9x16x16xbf16, #tpu.memory_space<vmem>>, vector<1x16x16xbf16>
    %20 = vector.shape_cast %19 : vector<1x16x16xbf16> to vector<16x16xbf16>
    %21 = vector.extract_strided_slice %4 {offsets = [0, 34], sizes = [16, 1088], strides = [1, 1]} : vector<16x1280xbf16> to vector<16x1088xbf16>
    %cst_16 = arith.constant dense<0.000000e+00> : vector<16x1088xf32>
    %22 = tpu.matmul %20, %21, %cst_16 {dimension_numbers = #tpu.dot_dimension_numbers<[1], [0], [0], [1], [0, 0, 1, 1], [], []>} : vector<16x16xbf16>, vector<16x1088xbf16>, vector<16x1088xf32> -> vector<16x1088xf32>
    %23 = arith.addf %18, %22 : vector<16x1088xf32>
    %c4 = arith.constant 4 : index
    %c0_17 = arith.constant 0 : index
    %c0_18 = arith.constant 0 : index
    %24 = vector.load %arg3[%c4, %c0_17, %c0_18] : memref<9x16x16xbf16, #tpu.memory_space<vmem>>, vector<1x16x16xbf16>
    %25 = vector.shape_cast %24 : vector<1x16x16xbf16> to vector<16x16xbf16>
    %26 = vector.extract_strided_slice %4 {offsets = [0, 35], sizes = [16, 1088], strides = [1, 1]} : vector<16x1280xbf16> to vector<16x1088xbf16>
    %cst_19 = arith.constant dense<0.000000e+00> : vector<16x1088xf32>
    %27 = tpu.matmul %25, %26, %cst_19 {dimension_numbers = #tpu.dot_dimension_numbers<[1], [0], [0], [1], [0, 0, 1, 1], [], []>} : vector<16x16xbf16>, vector<16x1088xbf16>, vector<16x1088xf32> -> vector<16x1088xf32>
    %28 = arith.addf %23, %27 : vector<16x1088xf32>
    %c5 = arith.constant 5 : index
    %c0_20 = arith.constant 0 : index
    %c0_21 = arith.constant 0 : index
    %29 = vector.load %arg3[%c5, %c0_20, %c0_21] : memref<9x16x16xbf16, #tpu.memory_space<vmem>>, vector<1x16x16xbf16>
    %30 = vector.shape_cast %29 : vector<1x16x16xbf16> to vector<16x16xbf16>
    %31 = vector.extract_strided_slice %4 {offsets = [0, 36], sizes = [16, 1088], strides = [1, 1]} : vector<16x1280xbf16> to vector<16x1088xbf16>
    %cst_22 = arith.constant dense<0.000000e+00> : vector<16x1088xf32>
    %32 = tpu.matmul %30, %31, %cst_22 {dimension_numbers = #tpu.dot_dimension_numbers<[1], [0], [0], [1], [0, 0, 1, 1], [], []>} : vector<16x16xbf16>, vector<16x1088xbf16>, vector<16x1088xf32> -> vector<16x1088xf32>
    %33 = arith.addf %28, %32 : vector<16x1088xf32>
    %c6 = arith.constant 6 : index
    %c0_23 = arith.constant 0 : index
    %c0_24 = arith.constant 0 : index
    %34 = vector.load %arg3[%c6, %c0_23, %c0_24] : memref<9x16x16xbf16, #tpu.memory_space<vmem>>, vector<1x16x16xbf16>
    %35 = vector.shape_cast %34 : vector<1x16x16xbf16> to vector<16x16xbf16>
    %36 = vector.extract_strided_slice %4 {offsets = [0, 68], sizes = [16, 1088], strides = [1, 1]} : vector<16x1280xbf16> to vector<16x1088xbf16>
    %cst_25 = arith.constant dense<0.000000e+00> : vector<16x1088xf32>
    %37 = tpu.matmul %35, %36, %cst_25 {dimension_numbers = #tpu.dot_dimension_numbers<[1], [0], [0], [1], [0, 0, 1, 1], [], []>} : vector<16x16xbf16>, vector<16x1088xbf16>, vector<16x1088xf32> -> vector<16x1088xf32>
    %38 = arith.addf %33, %37 : vector<16x1088xf32>
    %c7 = arith.constant 7 : index
    %c0_26 = arith.constant 0 : index
    %c0_27 = arith.constant 0 : index
    %39 = vector.load %arg3[%c7, %c0_26, %c0_27] : memref<9x16x16xbf16, #tpu.memory_space<vmem>>, vector<1x16x16xbf16>
    %40 = vector.shape_cast %39 : vector<1x16x16xbf16> to vector<16x16xbf16>
    %41 = vector.extract_strided_slice %4 {offsets = [0, 69], sizes = [16, 1088], strides = [1, 1]} : vector<16x1280xbf16> to vector<16x1088xbf16>
    %cst_28 = arith.constant dense<0.000000e+00> : vector<16x1088xf32>
    %42 = tpu.matmul %40, %41, %cst_28 {dimension_numbers = #tpu.dot_dimension_numbers<[1], [0], [0], [1], [0, 0, 1, 1], [], []>} : vector<16x16xbf16>, vector<16x1088xbf16>, vector<16x1088xf32> -> vector<16x1088xf32>
    %43 = arith.addf %38, %42 : vector<16x1088xf32>
    %c8 = arith.constant 8 : index
    %c0_29 = arith.constant 0 : index
    %c0_30 = arith.constant 0 : index
    %44 = vector.load %arg3[%c8, %c0_29, %c0_30] : memref<9x16x16xbf16, #tpu.memory_space<vmem>>, vector<1x16x16xbf16>
    %45 = vector.shape_cast %44 : vector<1x16x16xbf16> to vector<16x16xbf16>
    %46 = vector.extract_strided_slice %4 {offsets = [0, 70], sizes = [16, 1088], strides = [1, 1]} : vector<16x1280xbf16> to vector<16x1088xbf16>
    %cst_31 = arith.constant dense<0.000000e+00> : vector<16x1088xf32>
    %47 = tpu.matmul %45, %46, %cst_31 {dimension_numbers = #tpu.dot_dimension_numbers<[1], [0], [0], [1], [0, 0, 1, 1], [], []>} : vector<16x16xbf16>, vector<16x1088xbf16>, vector<16x1088xf32> -> vector<16x1088xf32>
    %48 = arith.addf %43, %47 : vector<16x1088xf32>
    %c0_32 = arith.constant 0 : index
    %c0_33 = arith.constant 0 : index
    %49 = vector.load %arg4[%c0_32, %c0_33] : memref<16x1xf32, #tpu.memory_space<vmem>>, vector<16x1xf32>
    %50 = vector.broadcast %49 : vector<16x1xf32> to vector<16x1088xf32>
    %51 = arith.mulf %48, %50 : vector<16x1088xf32>
    %c0_34 = arith.constant 0 : index
    %c0_35 = arith.constant 0 : index
    %52 = vector.load %arg5[%c0_34, %c0_35] : memref<16x1xf32, #tpu.memory_space<vmem>>, vector<16x1xf32>
    %53 = vector.broadcast %52 : vector<16x1xf32> to vector<16x1088xf32>
    %54 = arith.addf %51, %53 : vector<16x1088xf32>
    %cst_36 = arith.constant 0.000000e+00 : f32
    %55 = vector.broadcast %cst_36 : f32 to vector<16x1088xf32>
    %56 = arith.cmpf oge, %54, %55 : vector<16x1088xf32>
    %cst_37 = arith.constant 1.000000e-01 : f32
    %57 = vector.broadcast %cst_37 : f32 to vector<16x1088xf32>
    %58 = arith.mulf %57, %54 : vector<16x1088xf32>
    %59 = arith.select %56, %54, %58 : vector<16x1088xi1>, vector<16x1088xf32>
    %60 = vector.extract_strided_slice %59 {offsets = [0, 0], sizes = [16, 32], strides = [1, 1]} : vector<16x1088xf32> to vector<16x32xf32>
    %c0_38 = arith.constant 0 : index
    %c0_39 = arith.constant 0 : index
    %c0_40 = arith.constant 0 : index
    %61 = vector.load %arg6[%c0_38, %c0_39, %c0_40] : memref<1x16x1024xf32, #tpu.memory_space<vmem>>, vector<1x16x32xf32>
    %62 = vector.shape_cast %61 : vector<1x16x32xf32> to vector<16x32xf32>
    %63 = vector.shape_cast %60 : vector<16x32xf32> to vector<1x16x32xf32>
    tpu.vector_store %arg6[%c0_38, %c0_39, %c0_40], %63 {strides = array<i32>} : memref<1x16x1024xf32, #tpu.memory_space<vmem>>, vector<1x16x32xf32>,
    %64 = vector.extract_strided_slice %59 {offsets = [0, 34], sizes = [16, 32], strides = [1, 1]} : vector<16x1088xf32> to vector<16x32xf32>
    %c0_41 = arith.constant 0 : index
    %c0_42 = arith.constant 0 : index
    %c32 = arith.constant 32 : index
    %65 = vector.load %arg6[%c0_41, %c0_42, %c32] : memref<1x16x1024xf32, #tpu.memory_space<vmem>>, vector<1x16x32xf32>
    %66 = vector.shape_cast %65 : vector<1x16x32xf32> to vector<16x32xf32>
    %67 = vector.shape_cast %64 : vector<16x32xf32> to vector<1x16x32xf32>
    tpu.vector_store %arg6[%c0_41, %c0_42, %c32], %67 {strides = array<i32>} : memref<1x16x1024xf32, #tpu.memory_space<vmem>>, vector<1x16x32xf32>,
    %68 = vector.extract_strided_slice %59 {offsets = [0, 68], sizes = [16, 32], strides = [1, 1]} : vector<16x1088xf32> to vector<16x32xf32>
    %c0_43 = arith.constant 0 : index
    %c0_44 = arith.constant 0 : index
    %c64 = arith.constant 64 : index
    %69 = vector.load %arg6[%c0_43, %c0_44, %c64] : memref<1x16x1024xf32, #tpu.memory_space<vmem>>, vector<1x16x32xf32>
    %70 = vector.shape_cast %69 : vector<1x16x32xf32> to vector<16x32xf32>
    %71 = vector.shape_cast %68 : vector<16x32xf32> to vector<1x16x32xf32>
    tpu.vector_store %arg6[%c0_43, %c0_44, %c64], %71 {strides = array<i32>} : memref<1x16x1024xf32, #tpu.memory_space<vmem>>, vector<1x16x32xf32>,
    %72 = vector.extract_strided_slice %59 {offsets = [0, 102], sizes = [16, 32], strides = [1, 1]} : vector<16x1088xf32> to vector<16x32xf32>
    %c0_45 = arith.constant 0 : index
    %c0_46 = arith.constant 0 : index
    %c96 = arith.constant 96 : index
    %73 = vector.load %arg6[%c0_45, %c0_46, %c96] : memref<1x16x1024xf32, #tpu.memory_space<vmem>>, vector<1x16x32xf32>
    %74 = vector.shape_cast %73 : vector<1x16x32xf32> to vector<16x32xf32>
    %75 = vector.shape_cast %72 : vector<16x32xf32> to vector<1x16x32xf32>
    tpu.vector_store %arg6[%c0_45, %c0_46, %c96], %75 {strides = array<i32>} : memref<1x16x1024xf32, #tpu.memory_space<vmem>>, vector<1x16x32xf32>,
    %76 = vector.extract_strided_slice %59 {offsets = [0, 136], sizes = [16, 32], strides = [1, 1]} : vector<16x1088xf32> to vector<16x32xf32>
    %c0_47 = arith.constant 0 : index
    %c0_48 = arith.constant 0 : index
    %c128 = arith.constant 128 : index
    %77 = vector.load %arg6[%c0_47, %c0_48, %c128] : memref<1x16x1024xf32, #tpu.memory_space<vmem>>, vector<1x16x32xf32>
    %78 = vector.shape_cast %77 : vector<1x16x32xf32> to vector<16x32xf32>
    %79 = vector.shape_cast %76 : vector<16x32xf32> to vector<1x16x32xf32>
    tpu.vector_store %arg6[%c0_47, %c0_48, %c128], %79 {strides = array<i32>} : memref<1x16x1024xf32, #tpu.memory_space<vmem>>, vector<1x16x32xf32>,
    %80 = vector.extract_strided_slice %59 {offsets = [0, 170], sizes = [16, 32], strides = [1, 1]} : vector<16x1088xf32> to vector<16x32xf32>
    %c0_49 = arith.constant 0 : index
    %c0_50 = arith.constant 0 : index
    %c160 = arith.constant 160 : index
    %81 = vector.load %arg6[%c0_49, %c0_50, %c160] : memref<1x16x1024xf32, #tpu.memory_space<vmem>>, vector<1x16x32xf32>
    %82 = vector.shape_cast %81 : vector<1x16x32xf32> to vector<16x32xf32>
    %83 = vector.shape_cast %80 : vector<16x32xf32> to vector<1x16x32xf32>
    tpu.vector_store %arg6[%c0_49, %c0_50, %c160], %83 {strides = array<i32>} : memref<1x16x1024xf32, #tpu.memory_space<vmem>>, vector<1x16x32xf32>,
    %84 = vector.extract_strided_slice %59 {offsets = [0, 204], sizes = [16, 32], strides = [1, 1]} : vector<16x1088xf32> to vector<16x32xf32>
    %c0_51 = arith.constant 0 : index
    %c0_52 = arith.constant 0 : index
    %c192 = arith.constant 192 : index
    %85 = vector.load %arg6[%c0_51, %c0_52, %c192] : memref<1x16x1024xf32, #tpu.memory_space<vmem>>, vector<1x16x32xf32>
    %86 = vector.shape_cast %85 : vector<1x16x32xf32> to vector<16x32xf32>
    %87 = vector.shape_cast %84 : vector<16x32xf32> to vector<1x16x32xf32>
    tpu.vector_store %arg6[%c0_51, %c0_52, %c192], %87 {strides = array<i32>} : memref<1x16x1024xf32, #tpu.memory_space<vmem>>, vector<1x16x32xf32>,
    %88 = vector.extract_strided_slice %59 {offsets = [0, 238], sizes = [16, 32], strides = [1, 1]} : vector<16x1088xf32> to vector<16x32xf32>
    %c0_53 = arith.constant 0 : index
    %c0_54 = arith.constant 0 : index
    %c224 = arith.constant 224 : index
    %89 = vector.load %arg6[%c0_53, %c0_54, %c224] : memref<1x16x1024xf32, #tpu.memory_space<vmem>>, vector<1x16x32xf32>
    %90 = vector.shape_cast %89 : vector<1x16x32xf32> to vector<16x32xf32>
    %91 = vector.shape_cast %88 : vector<16x32xf32> to vector<1x16x32xf32>
    tpu.vector_store %arg6[%c0_53, %c0_54, %c224], %91 {strides = array<i32>} : memref<1x16x1024xf32, #tpu.memory_space<vmem>>, vector<1x16x32xf32>,
    %92 = vector.extract_strided_slice %59 {offsets = [0, 272], sizes = [16, 32], strides = [1, 1]} : vector<16x1088xf32> to vector<16x32xf32>
    %c0_55 = arith.constant 0 : index
    %c0_56 = arith.constant 0 : index
    %c256 = arith.constant 256 : index
    %93 = vector.load %arg6[%c0_55, %c0_56, %c256] : memref<1x16x1024xf32, #tpu.memory_space<vmem>>, vector<1x16x32xf32>
    %94 = vector.shape_cast %93 : vector<1x16x32xf32> to vector<16x32xf32>
    %95 = vector.shape_cast %92 : vector<16x32xf32> to vector<1x16x32xf32>
    tpu.vector_store %arg6[%c0_55, %c0_56, %c256], %95 {strides = array<i32>} : memref<1x16x1024xf32, #tpu.memory_space<vmem>>, vector<1x16x32xf32>,
    %96 = vector.extract_strided_slice %59 {offsets = [0, 306], sizes = [16, 32], strides = [1, 1]} : vector<16x1088xf32> to vector<16x32xf32>
    %c0_57 = arith.constant 0 : index
    %c0_58 = arith.constant 0 : index
    %c288 = arith.constant 288 : index
    %97 = vector.load %arg6[%c0_57, %c0_58, %c288] : memref<1x16x1024xf32, #tpu.memory_space<vmem>>, vector<1x16x32xf32>
    %98 = vector.shape_cast %97 : vector<1x16x32xf32> to vector<16x32xf32>
    %99 = vector.shape_cast %96 : vector<16x32xf32> to vector<1x16x32xf32>
    tpu.vector_store %arg6[%c0_57, %c0_58, %c288], %99 {strides = array<i32>} : memref<1x16x1024xf32, #tpu.memory_space<vmem>>, vector<1x16x32xf32>,
    %100 = vector.extract_strided_slice %59 {offsets = [0, 340], sizes = [16, 32], strides = [1, 1]} : vector<16x1088xf32> to vector<16x32xf32>
    %c0_59 = arith.constant 0 : index
    %c0_60 = arith.constant 0 : index
    %c320 = arith.constant 320 : index
    %101 = vector.load %arg6[%c0_59, %c0_60, %c320] : memref<1x16x1024xf32, #tpu.memory_space<vmem>>, vector<1x16x32xf32>
    %102 = vector.shape_cast %101 : vector<1x16x32xf32> to vector<16x32xf32>
    %103 = vector.shape_cast %100 : vector<16x32xf32> to vector<1x16x32xf32>
    tpu.vector_store %arg6[%c0_59, %c0_60, %c320], %103 {strides = array<i32>} : memref<1x16x1024xf32, #tpu.memory_space<vmem>>, vector<1x16x32xf32>,
    %104 = vector.extract_strided_slice %59 {offsets = [0, 374], sizes = [16, 32], strides = [1, 1]} : vector<16x1088xf32> to vector<16x32xf32>
    %c0_61 = arith.constant 0 : index
    %c0_62 = arith.constant 0 : index
    %c352 = arith.constant 352 : index
    %105 = vector.load %arg6[%c0_61, %c0_62, %c352] : memref<1x16x1024xf32, #tpu.memory_space<vmem>>, vector<1x16x32xf32>
    %106 = vector.shape_cast %105 : vector<1x16x32xf32> to vector<16x32xf32>
    %107 = vector.shape_cast %104 : vector<16x32xf32> to vector<1x16x32xf32>
    tpu.vector_store %arg6[%c0_61, %c0_62, %c352], %107 {strides = array<i32>} : memref<1x16x1024xf32, #tpu.memory_space<vmem>>, vector<1x16x32xf32>,
    %108 = vector.extract_strided_slice %59 {offsets = [0, 408], sizes = [16, 32], strides = [1, 1]} : vector<16x1088xf32> to vector<16x32xf32>
    %c0_63 = arith.constant 0 : index
    %c0_64 = arith.constant 0 : index
    %c384 = arith.constant 384 : index
    %109 = vector.load %arg6[%c0_63, %c0_64, %c384] : memref<1x16x1024xf32, #tpu.memory_space<vmem>>, vector<1x16x32xf32>
    %110 = vector.shape_cast %109 : vector<1x16x32xf32> to vector<16x32xf32>
    %111 = vector.shape_cast %108 : vector<16x32xf32> to vector<1x16x32xf32>
    tpu.vector_store %arg6[%c0_63, %c0_64, %c384], %111 {strides = array<i32>} : memref<1x16x1024xf32, #tpu.memory_space<vmem>>, vector<1x16x32xf32>,
    %112 = vector.extract_strided_slice %59 {offsets = [0, 442], sizes = [16, 32], strides = [1, 1]} : vector<16x1088xf32> to vector<16x32xf32>
    %c0_65 = arith.constant 0 : index
    %c0_66 = arith.constant 0 : index
    %c416 = arith.constant 416 : index
    %113 = vector.load %arg6[%c0_65, %c0_66, %c416] : memref<1x16x1024xf32, #tpu.memory_space<vmem>>, vector<1x16x32xf32>
    %114 = vector.shape_cast %113 : vector<1x16x32xf32> to vector<16x32xf32>
    %115 = vector.shape_cast %112 : vector<16x32xf32> to vector<1x16x32xf32>
    tpu.vector_store %arg6[%c0_65, %c0_66, %c416], %115 {strides = array<i32>} : memref<1x16x1024xf32, #tpu.memory_space<vmem>>, vector<1x16x32xf32>,
    %116 = vector.extract_strided_slice %59 {offsets = [0, 476], sizes = [16, 32], strides = [1, 1]} : vector<16x1088xf32> to vector<16x32xf32>
    %c0_67 = arith.constant 0 : index
    %c0_68 = arith.constant 0 : index
    %c448 = arith.constant 448 : index
    %117 = vector.load %arg6[%c0_67, %c0_68, %c448] : memref<1x16x1024xf32, #tpu.memory_space<vmem>>, vector<1x16x32xf32>
    %118 = vector.shape_cast %117 : vector<1x16x32xf32> to vector<16x32xf32>
    %119 = vector.shape_cast %116 : vector<16x32xf32> to vector<1x16x32xf32>
    tpu.vector_store %arg6[%c0_67, %c0_68, %c448], %119 {strides = array<i32>} : memref<1x16x1024xf32, #tpu.memory_space<vmem>>, vector<1x16x32xf32>,
    %120 = vector.extract_strided_slice %59 {offsets = [0, 510], sizes = [16, 32], strides = [1, 1]} : vector<16x1088xf32> to vector<16x32xf32>
    %c0_69 = arith.constant 0 : index
    %c0_70 = arith.constant 0 : index
    %c480 = arith.constant 480 : index
    %121 = vector.load %arg6[%c0_69, %c0_70, %c480] : memref<1x16x1024xf32, #tpu.memory_space<vmem>>, vector<1x16x32xf32>
    %122 = vector.shape_cast %121 : vector<1x16x32xf32> to vector<16x32xf32>
    %123 = vector.shape_cast %120 : vector<16x32xf32> to vector<1x16x32xf32>
    tpu.vector_store %arg6[%c0_69, %c0_70, %c480], %123 {strides = array<i32>} : memref<1x16x1024xf32, #tpu.memory_space<vmem>>, vector<1x16x32xf32>,
    %124 = vector.extract_strided_slice %59 {offsets = [0, 544], sizes = [16, 32], strides = [1, 1]} : vector<16x1088xf32> to vector<16x32xf32>
    %c0_71 = arith.constant 0 : index
    %c0_72 = arith.constant 0 : index
    %c512 = arith.constant 512 : index
    %125 = vector.load %arg6[%c0_71, %c0_72, %c512] : memref<1x16x1024xf32, #tpu.memory_space<vmem>>, vector<1x16x32xf32>
    %126 = vector.shape_cast %125 : vector<1x16x32xf32> to vector<16x32xf32>
    %127 = vector.shape_cast %124 : vector<16x32xf32> to vector<1x16x32xf32>
    tpu.vector_store %arg6[%c0_71, %c0_72, %c512], %127 {strides = array<i32>} : memref<1x16x1024xf32, #tpu.memory_space<vmem>>, vector<1x16x32xf32>,
    %128 = vector.extract_strided_slice %59 {offsets = [0, 578], sizes = [16, 32], strides = [1, 1]} : vector<16x1088xf32> to vector<16x32xf32>
    %c0_73 = arith.constant 0 : index
    %c0_74 = arith.constant 0 : index
    %c544 = arith.constant 544 : index
    %129 = vector.load %arg6[%c0_73, %c0_74, %c544] : memref<1x16x1024xf32, #tpu.memory_space<vmem>>, vector<1x16x32xf32>
    %130 = vector.shape_cast %129 : vector<1x16x32xf32> to vector<16x32xf32>
    %131 = vector.shape_cast %128 : vector<16x32xf32> to vector<1x16x32xf32>
    tpu.vector_store %arg6[%c0_73, %c0_74, %c544], %131 {strides = array<i32>} : memref<1x16x1024xf32, #tpu.memory_space<vmem>>, vector<1x16x32xf32>,
    %132 = vector.extract_strided_slice %59 {offsets = [0, 612], sizes = [16, 32], strides = [1, 1]} : vector<16x1088xf32> to vector<16x32xf32>
    %c0_75 = arith.constant 0 : index
    %c0_76 = arith.constant 0 : index
    %c576 = arith.constant 576 : index
    %133 = vector.load %arg6[%c0_75, %c0_76, %c576] : memref<1x16x1024xf32, #tpu.memory_space<vmem>>, vector<1x16x32xf32>
    %134 = vector.shape_cast %133 : vector<1x16x32xf32> to vector<16x32xf32>
    %135 = vector.shape_cast %132 : vector<16x32xf32> to vector<1x16x32xf32>
    tpu.vector_store %arg6[%c0_75, %c0_76, %c576], %135 {strides = array<i32>} : memref<1x16x1024xf32, #tpu.memory_space<vmem>>, vector<1x16x32xf32>,
    %136 = vector.extract_strided_slice %59 {offsets = [0, 646], sizes = [16, 32], strides = [1, 1]} : vector<16x1088xf32> to vector<16x32xf32>
    %c0_77 = arith.constant 0 : index
    %c0_78 = arith.constant 0 : index
    %c608 = arith.constant 608 : index
    %137 = vector.load %arg6[%c0_77, %c0_78, %c608] : memref<1x16x1024xf32, #tpu.memory_space<vmem>>, vector<1x16x32xf32>
    %138 = vector.shape_cast %137 : vector<1x16x32xf32> to vector<16x32xf32>
    %139 = vector.shape_cast %136 : vector<16x32xf32> to vector<1x16x32xf32>
    tpu.vector_store %arg6[%c0_77, %c0_78, %c608], %139 {strides = array<i32>} : memref<1x16x1024xf32, #tpu.memory_space<vmem>>, vector<1x16x32xf32>,
    %140 = vector.extract_strided_slice %59 {offsets = [0, 680], sizes = [16, 32], strides = [1, 1]} : vector<16x1088xf32> to vector<16x32xf32>
    %c0_79 = arith.constant 0 : index
    %c0_80 = arith.constant 0 : index
    %c640 = arith.constant 640 : index
    %141 = vector.load %arg6[%c0_79, %c0_80, %c640] : memref<1x16x1024xf32, #tpu.memory_space<vmem>>, vector<1x16x32xf32>
    %142 = vector.shape_cast %141 : vector<1x16x32xf32> to vector<16x32xf32>
    %143 = vector.shape_cast %140 : vector<16x32xf32> to vector<1x16x32xf32>
    tpu.vector_store %arg6[%c0_79, %c0_80, %c640], %143 {strides = array<i32>} : memref<1x16x1024xf32, #tpu.memory_space<vmem>>, vector<1x16x32xf32>,
    %144 = vector.extract_strided_slice %59 {offsets = [0, 714], sizes = [16, 32], strides = [1, 1]} : vector<16x1088xf32> to vector<16x32xf32>
    %c0_81 = arith.constant 0 : index
    %c0_82 = arith.constant 0 : index
    %c672 = arith.constant 672 : index
    %145 = vector.load %arg6[%c0_81, %c0_82, %c672] : memref<1x16x1024xf32, #tpu.memory_space<vmem>>, vector<1x16x32xf32>
    %146 = vector.shape_cast %145 : vector<1x16x32xf32> to vector<16x32xf32>
    %147 = vector.shape_cast %144 : vector<16x32xf32> to vector<1x16x32xf32>
    tpu.vector_store %arg6[%c0_81, %c0_82, %c672], %147 {strides = array<i32>} : memref<1x16x1024xf32, #tpu.memory_space<vmem>>, vector<1x16x32xf32>,
    %148 = vector.extract_strided_slice %59 {offsets = [0, 748], sizes = [16, 32], strides = [1, 1]} : vector<16x1088xf32> to vector<16x32xf32>
    %c0_83 = arith.constant 0 : index
    %c0_84 = arith.constant 0 : index
    %c704 = arith.constant 704 : index
    %149 = vector.load %arg6[%c0_83, %c0_84, %c704] : memref<1x16x1024xf32, #tpu.memory_space<vmem>>, vector<1x16x32xf32>
    %150 = vector.shape_cast %149 : vector<1x16x32xf32> to vector<16x32xf32>
    %151 = vector.shape_cast %148 : vector<16x32xf32> to vector<1x16x32xf32>
    tpu.vector_store %arg6[%c0_83, %c0_84, %c704], %151 {strides = array<i32>} : memref<1x16x1024xf32, #tpu.memory_space<vmem>>, vector<1x16x32xf32>,
    %152 = vector.extract_strided_slice %59 {offsets = [0, 782], sizes = [16, 32], strides = [1, 1]} : vector<16x1088xf32> to vector<16x32xf32>
    %c0_85 = arith.constant 0 : index
    %c0_86 = arith.constant 0 : index
    %c736 = arith.constant 736 : index
    %153 = vector.load %arg6[%c0_85, %c0_86, %c736] : memref<1x16x1024xf32, #tpu.memory_space<vmem>>, vector<1x16x32xf32>
    %154 = vector.shape_cast %153 : vector<1x16x32xf32> to vector<16x32xf32>
    %155 = vector.shape_cast %152 : vector<16x32xf32> to vector<1x16x32xf32>
    tpu.vector_store %arg6[%c0_85, %c0_86, %c736], %155 {strides = array<i32>} : memref<1x16x1024xf32, #tpu.memory_space<vmem>>, vector<1x16x32xf32>,
    %156 = vector.extract_strided_slice %59 {offsets = [0, 816], sizes = [16, 32], strides = [1, 1]} : vector<16x1088xf32> to vector<16x32xf32>
    %c0_87 = arith.constant 0 : index
    %c0_88 = arith.constant 0 : index
    %c768 = arith.constant 768 : index
    %157 = vector.load %arg6[%c0_87, %c0_88, %c768] : memref<1x16x1024xf32, #tpu.memory_space<vmem>>, vector<1x16x32xf32>
    %158 = vector.shape_cast %157 : vector<1x16x32xf32> to vector<16x32xf32>
    %159 = vector.shape_cast %156 : vector<16x32xf32> to vector<1x16x32xf32>
    tpu.vector_store %arg6[%c0_87, %c0_88, %c768], %159 {strides = array<i32>} : memref<1x16x1024xf32, #tpu.memory_space<vmem>>, vector<1x16x32xf32>,
    %160 = vector.extract_strided_slice %59 {offsets = [0, 850], sizes = [16, 32], strides = [1, 1]} : vector<16x1088xf32> to vector<16x32xf32>
    %c0_89 = arith.constant 0 : index
    %c0_90 = arith.constant 0 : index
    %c800 = arith.constant 800 : index
    %161 = vector.load %arg6[%c0_89, %c0_90, %c800] : memref<1x16x1024xf32, #tpu.memory_space<vmem>>, vector<1x16x32xf32>
    %162 = vector.shape_cast %161 : vector<1x16x32xf32> to vector<16x32xf32>
    %163 = vector.shape_cast %160 : vector<16x32xf32> to vector<1x16x32xf32>
    tpu.vector_store %arg6[%c0_89, %c0_90, %c800], %163 {strides = array<i32>} : memref<1x16x1024xf32, #tpu.memory_space<vmem>>, vector<1x16x32xf32>,
    %164 = vector.extract_strided_slice %59 {offsets = [0, 884], sizes = [16, 32], strides = [1, 1]} : vector<16x1088xf32> to vector<16x32xf32>
    %c0_91 = arith.constant 0 : index
    %c0_92 = arith.constant 0 : index
    %c832 = arith.constant 832 : index
    %165 = vector.load %arg6[%c0_91, %c0_92, %c832] : memref<1x16x1024xf32, #tpu.memory_space<vmem>>, vector<1x16x32xf32>
    %166 = vector.shape_cast %165 : vector<1x16x32xf32> to vector<16x32xf32>
    %167 = vector.shape_cast %164 : vector<16x32xf32> to vector<1x16x32xf32>
    tpu.vector_store %arg6[%c0_91, %c0_92, %c832], %167 {strides = array<i32>} : memref<1x16x1024xf32, #tpu.memory_space<vmem>>, vector<1x16x32xf32>,
    %168 = vector.extract_strided_slice %59 {offsets = [0, 918], sizes = [16, 32], strides = [1, 1]} : vector<16x1088xf32> to vector<16x32xf32>
    %c0_93 = arith.constant 0 : index
    %c0_94 = arith.constant 0 : index
    %c864 = arith.constant 864 : index
    %169 = vector.load %arg6[%c0_93, %c0_94, %c864] : memref<1x16x1024xf32, #tpu.memory_space<vmem>>, vector<1x16x32xf32>
    %170 = vector.shape_cast %169 : vector<1x16x32xf32> to vector<16x32xf32>
    %171 = vector.shape_cast %168 : vector<16x32xf32> to vector<1x16x32xf32>
    tpu.vector_store %arg6[%c0_93, %c0_94, %c864], %171 {strides = array<i32>} : memref<1x16x1024xf32, #tpu.memory_space<vmem>>, vector<1x16x32xf32>,
    %172 = vector.extract_strided_slice %59 {offsets = [0, 952], sizes = [16, 32], strides = [1, 1]} : vector<16x1088xf32> to vector<16x32xf32>
    %c0_95 = arith.constant 0 : index
    %c0_96 = arith.constant 0 : index
    %c896 = arith.constant 896 : index
    %173 = vector.load %arg6[%c0_95, %c0_96, %c896] : memref<1x16x1024xf32, #tpu.memory_space<vmem>>, vector<1x16x32xf32>
    %174 = vector.shape_cast %173 : vector<1x16x32xf32> to vector<16x32xf32>
    %175 = vector.shape_cast %172 : vector<16x32xf32> to vector<1x16x32xf32>
    tpu.vector_store %arg6[%c0_95, %c0_96, %c896], %175 {strides = array<i32>} : memref<1x16x1024xf32, #tpu.memory_space<vmem>>, vector<1x16x32xf32>,
    %176 = vector.extract_strided_slice %59 {offsets = [0, 986], sizes = [16, 32], strides = [1, 1]} : vector<16x1088xf32> to vector<16x32xf32>
    %c0_97 = arith.constant 0 : index
    %c0_98 = arith.constant 0 : index
    %c928 = arith.constant 928 : index
    %177 = vector.load %arg6[%c0_97, %c0_98, %c928] : memref<1x16x1024xf32, #tpu.memory_space<vmem>>, vector<1x16x32xf32>
    %178 = vector.shape_cast %177 : vector<1x16x32xf32> to vector<16x32xf32>
    %179 = vector.shape_cast %176 : vector<16x32xf32> to vector<1x16x32xf32>
    tpu.vector_store %arg6[%c0_97, %c0_98, %c928], %179 {strides = array<i32>} : memref<1x16x1024xf32, #tpu.memory_space<vmem>>, vector<1x16x32xf32>,
    %180 = vector.extract_strided_slice %59 {offsets = [0, 1020], sizes = [16, 32], strides = [1, 1]} : vector<16x1088xf32> to vector<16x32xf32>
    %c0_99 = arith.constant 0 : index
    %c0_100 = arith.constant 0 : index
    %c960 = arith.constant 960 : index
    %181 = vector.load %arg6[%c0_99, %c0_100, %c960] : memref<1x16x1024xf32, #tpu.memory_space<vmem>>, vector<1x16x32xf32>
    %182 = vector.shape_cast %181 : vector<1x16x32xf32> to vector<16x32xf32>
    %183 = vector.shape_cast %180 : vector<16x32xf32> to vector<1x16x32xf32>
    tpu.vector_store %arg6[%c0_99, %c0_100, %c960], %183 {strides = array<i32>} : memref<1x16x1024xf32, #tpu.memory_space<vmem>>, vector<1x16x32xf32>,
    %184 = vector.extract_strided_slice %59 {offsets = [0, 1054], sizes = [16, 32], strides = [1, 1]} : vector<16x1088xf32> to vector<16x32xf32>
    %c0_101 = arith.constant 0 : index
    %c0_102 = arith.constant 0 : index
    %c992 = arith.constant 992 : index
    %185 = vector.load %arg6[%c0_101, %c0_102, %c992] : memref<1x16x1024xf32, #tpu.memory_space<vmem>>, vector<1x16x32xf32>
    %186 = vector.shape_cast %185 : vector<1x16x32xf32> to vector<16x32xf32>
    %187 = vector.shape_cast %184 : vector<16x32xf32> to vector<1x16x32xf32>
    tpu.vector_store %arg6[%c0_101, %c0_102, %c992], %187 {strides = array<i32>} : memref<1x16x1024xf32, #tpu.memory_space<vmem>>, vector<1x16x32xf32>,
    return
  }
  func.func @transform_0(%arg0: i32) -> (i32, i32, i32) {
    %c0_i32 = arith.constant 0 : i32
    %c0_i32_0 = arith.constant 0 : i32
    %c0_i32_1 = arith.constant 0 : i32
    return %arg0, %c0_i32, %c0_i32_0 : i32, i32, i32
  }
  func.func @transform_1(%arg0: i32) -> (i32, i32, i32) {
    %c0_i32 = arith.constant 0 : i32
    %c0_i32_0 = arith.constant 0 : i32
    %c0_i32_1 = arith.constant 0 : i32
    return %arg0, %c0_i32, %c0_i32_0 : i32, i32, i32
  }
  func.func @transform_2(%arg0: i32) -> (i32, i32, i32) {
    %c0_i32 = arith.constant 0 : i32
    %c0_i32_0 = arith.constant 0 : i32
    %c0_i32_1 = arith.constant 0 : i32
    %c0_i32_2 = arith.constant 0 : i32
    return %c0_i32, %c0_i32_0, %c0_i32_1 : i32, i32, i32
  }
  func.func @transform_3(%arg0: i32) -> (i32, i32) {
    %c0_i32 = arith.constant 0 : i32
    %c0_i32_0 = arith.constant 0 : i32
    %c0_i32_1 = arith.constant 0 : i32
    return %c0_i32, %c0_i32_0 : i32, i32
  }
  func.func @transform_4(%arg0: i32) -> (i32, i32) {
    %c0_i32 = arith.constant 0 : i32
    %c0_i32_0 = arith.constant 0 : i32
    %c0_i32_1 = arith.constant 0 : i32
    return %c0_i32, %c0_i32_0 : i32, i32
  }
  func.func @transform_5(%arg0: i32) -> (i32, i32, i32) {
    %c0_i32 = arith.constant 0 : i32
    %c0_i32_0 = arith.constant 0 : i32
    %c0_i32_1 = arith.constant 0 : i32
    return %arg0, %c0_i32, %c0_i32_0 : i32, i32, i32
  }
}

</mosaic_0001>

<bundles_post_ra>
// kernel: fpn_forward.2
= control target key start
LH: loop header
LB: loop body
LE: loop exit
PB: predicated region body
PF: predicated region fallthrough
CT: control target
= control target key end

     0   :  { %s722_s15 = smov 0   ;;  %s724_s16 = smov 0   ;;  %s832_s0 = inlined_call_operand.vmem [shape: bf16[2,8,1024], index: 0, kind: input, shape index: {}]   ;;  %s833_s1 = inlined_call_operand.vmem [shape: bf16[16,8], index: 1, kind: input, shape index: {}]   ;;  %s834_s2 = inlined_call_operand.vmem [shape: f32[16,1], index: 2, kind: input, shape index: {}]   ;;  %s835_s3 = inlined_call_operand.vmem [shape: f32[16,1], index: 3, kind: input, shape index: {}]   ;;  %s836_s4 = inlined_call_operand.vmem [shape: bf16[2,16,1024], index: 4, kind: output, shape index: {}]  }
   0x1   :  { %s726_s17 = smov 0   ;;  %s728_s18 = smov 0  }
   0x2   :  { %s730_s19 = smov 0   ;;  %s732_s20 = smov 0  }
   0x3   :  { %s734_s21 = smov 0  }
   0x4 LB: > { %s23_s22 = sadd.s32 1, %s686_s19  ;;  %s26_s23 = sadd.s32 1, %s690_s20  ;;  %s694_s21 = sphi %s734_s21, %s14_s21   ;;  %s690_s20 = sphi %s732_s20, %s843_s20   ;;  %s686_s19 = sphi %s730_s19, %s842_s19   ;;  %s682_s18 = sphi %s728_s18, %s841_s18   ;;  %s678_s17 = sphi %s726_s17, %s840_s17   ;;  %s674_s16 = sphi %s724_s16, %s839_s16   ;;  %s670_s15 = sphi %s722_s15, %s838_s15  }
   0x5   : > { %p24_p0 = scmp.ge.s32.totalorder %s23_s22, 2  ;;  %s544_s24 = sadd.s32 4294967295, %s694_s21  }
   0x6   : > { %p136_p1 = scmp.ne.s32.totalorder %s674_s16, %s670_s15  ;;  %p137_p2 = scmp.eq.s32.totalorder %s544_s24, 3 }
   0x7   : > { %s845_s22 = smov (%p24_p0, %s23_s22), 0  ;;  %s847_s23 = smov (!%p24_p0, %s26_s23), %s690_s20 }
   0x8   : > { %s122_s25 = ssub.s32 %s686_s19, %s845_s22  ;;  %p28_p3 = scmp.ge.s32.totalorder %s847_s23, 2 }
   0x9   : > { %p548_p4 = scmp.ge.s32.totalorder %s694_s21, 1  ;;  %p766_p5 = por %p137_p2, %p136_p1 }
   0xa   : > { %p183_p6 = scmp.lt.s32.totalorder %s694_s21, 5  ;;  %s849_s23 = smov (%p28_p3, %s847_s23), 0 }
   0xb   : > { %s121_s27 = ssub.s32 %s690_s20, %s849_s23  ;;  %s126_s29 = sadd.s32 1, %s674_s16 }
   0xc   : > { %p184_p7 = pnand %p548_p4, %p183_p6  ;;  %s123_s28 = sor.u32 %s122_s25, %s121_s27 }
   0xd   : > { %p124_p8 = scmp.eq.s32.totalorder %s123_s28, 0  ;;  %s779_s5 = sshll.u32 (!%p184_p7), %s678_s17, 2  ;;  %v696_v0 = vmov (!%p184_p7), 0   ;;  %v346_v1 = vld [vmem:[%s834_s2] sm:$0xff] (!%p184_p7)  ;;  %v347_v3 = vld [vmem:[%s834_s2 + $0x8] sm:$0xff] (!%p184_p7)  ;;  %vm247_vm0 = vcmask (!%p184_p7), 1043456  }
   0xe   : > { %187 = sbr.rel (%p184_p7) target bundleno = 270 (0x10e), region = 36  ;;  %p213_p9 = scmp.lt.s32.totalorder (!%p184_p7), %s682_s18, 1  ;;  %292 = vmatprep.mubr.bf16.mxu0 (!%p184_p7), %v696_v0  ;;  %335 = vmatprep.mubr.bf16.mxu1 (!%p184_p7), %v696_v0  ;;  %v366_v2 = vld [vmem:[%s835_s3] sm:$0xff] (!%p184_p7)  ;;  %v367_v4 = vld [vmem:[%s835_s3 + $0x8] sm:$0xff] (!%p184_p7)  ;;  %vm243_vm1 = vcmask (!%p184_p7), 64512  }
   0xf   : > { %s777_s30 = scalar_select %p124_p8, %s674_s16, %s126_s29  }
  0x10   : > { %p215_p10 = scmp.lt.s32.totalorder (!%p184_p7), %s779_s5, 7  ;;  %633 = vset.pattern.permute.xlu0 (!%p184_p7), %v696_v0  ;;  %634 = vset.pattern.permute.xlu1 (!%p184_p7), %v696_v0  ;;  %v639_v13 = vld [vmem:[%s833_s1] sm:$0xff] (!%p184_p7)   ;;  %s209_s9 = sand.u32 (!%p184_p7), 1, %s670_s15  }
  0x11   : > { %350 = vperm.xlu0 (!%p184_p7), %633, %v346_v1   ;;  %370 = vperm.xlu1 (!%p184_p7), %634, %v366_v2   ;;  %s549_s10 = sshll.u32 (!%p184_p7), %s209_s9, 5 }
  0x12   : > { %s211_s15 = scalar_lea.vmem (!%p184_p7), [#allocation2], %s549_s10 }
  0x15   : > { %s214_s8 = scalar_select %p213_p9, %s682_s18, 1  ;;  %355 = vperm.xlu0 %633, %v347_v3   ;;  %375 = vperm.xlu1 %634, %v367_v4  }
  0x16   : > { %s216_s11 = scalar_select %p215_p10, %s779_s5, 7 }
  0x17   : > { %s551_s12 = sshll.u32 %s214_s8, 3 }
  0x18   : > { %s218_s25 = sadd.s32 %s551_s12, %s216_s11  ;;  %s568_s11 = sshll.u32 (%p766_p5), %s682_s18, 4 }
  0x19   : > { %s552_s27 = sshll.u32 %s218_s25, 2  ;;  %s447_s12 = sadd.s32 (%p766_p5), %s568_s11, %s779_s5 }
  0x1a   : > { %s220_s6 = scalar_lea.vmem %s832_s0, %s552_s27  ;;  %s569_s13 = sshll.u32 (%p766_p5), %s447_s12, 2 }
  0x1b   : > { %v226_v5 = vld [vmem:[%s220_s6] sm:$0xff]  ;;  %v227_v6 = vld [vmem:[%s220_s6 + $0x8] sm:$0xff]  ;;  %s449_s24 = scalar_lea.vmem (%p766_p5), %s836_s4, %s569_s13 }
  0x1c   : > { %v555_v7 = vcombine.high %v226_v5, %v226_v5  ;;  %v557_v8 = vcombine.high %v227_v6, %v227_v6  ;;  %v554_v9 = vcombine.low %v226_v5, %v226_v5  ;;  %v556_v10 = vcombine.low %v227_v6, %v227_v6 }
  0x1e   : > { %558 = vmatprep.subr.msk.bf16.mxu0 %vm247_vm0, %v555_v7  ;;  %560 = vmatprep.subr.msk.bf16.mxu1 %vm247_vm0, %v557_v8  ;;  %v249_v11 = vsel %vm247_vm0, %v554_v9, 0  ;;  %v255_v12 = vsel %vm247_vm0, %v556_v10, 0 }
  0x1f   : > { %261 = vmatpush1.bf16.msra.mxu0 %v249_v11  ;;  %304 = vmatpush1.bf16.msra.mxu1 %v255_v12 }
  0x22   : > { %559 = vmatmul.mubr.msk.bf16.vlgmr.msra.gmra.mrb[0].mxu0 %vm243_vm1, %v639_v13  ;;  %561 = vmatmul.mubr.msk.bf16.vlgmr.msra.gmra.mrb[0].mxu1 %vm243_vm1, %v639_v13 }
  0x90   : > { %v351_v14 = vpop.permute.xlu0 %350  ;;  %v371_v15 = vpop.permute.xlu1 %370 }
  0x94   : > { %v356_v16 = vpop.permute.xlu0 %355  ;;  %v376_v39 = vpop.permute.xlu1 %375 }
  0xf5   : > { %v294_v17 = vpop.f32.mrb[0].mxu0  ;;  %v337_v18 = vpop.f32.mrb[0].mxu1 }
  0xf6   : > { %v358_v19 = vmul.f32 %v351_v14, %v294_v17  ;;  %v360_v20 = vmul.f32 %v351_v14, %v337_v18  ;;  %v296_v21 = vpop.f32.mrb[1].mxu0  ;;  %v339_v22 = vpop.f32.mrb[1].mxu1 }
  0xf7   : > { %v359_v23 = vmul.f32 %v351_v14, %v296_v21  ;;  %v361_v24 = vmul.f32 %v351_v14, %v339_v22  ;;  %v298_v25 = vpop.f32.mrb[2].mxu0  ;;  %v341_v26 = vpop.f32.mrb[2].mxu1 }
  0xf8   : > { %v378_v27 = vadd.f32 %v371_v15, %v358_v19  ;;  %v380_v28 = vadd.f32 %v371_v15, %v360_v20  ;;  %v362_v29 = vmul.f32 %v356_v16, %v298_v25  ;;  %v364_v30 = vmul.f32 %v356_v16, %v341_v26  ;;  %v300_v31 = vpop.f32.mrb[3].mxu0  ;;  %v343_v32 = vpop.f32.mrb[3].mxu1 }
  0xf9   : > { %v379_v33 = vadd.f32 %v371_v15, %v359_v23  ;;  %v381_v34 = vadd.f32 %v371_v15, %v361_v24  ;;  %v363_v35 = vmul.f32 %v356_v16, %v300_v31  ;;  %v365_v36 = vmul.f32 %v356_v16, %v343_v32 }
  0xfa   : > { %vm386_vm2 = vcmp.ge.f32.partialorder %v378_v27, 0.0  ;;  %v394_v37 = vmul.f32 0.1, %v378_v27  ;;  %vm388_vm3 = vcmp.ge.f32.partialorder %v380_v28, 0.0  ;;  %v396_v38 = vmul.f32 0.1, %v380_v28 }
  0xfb   : > { %vm387_vm4 = vcmp.ge.f32.partialorder %v379_v33, 0.0  ;;  %v395_v40 = vmul.f32 0.1, %v379_v33  ;;  %vm389_vm5 = vcmp.ge.f32.partialorder %v381_v34, 0.0  ;;  %v397_v41 = vmul.f32 0.1, %v381_v34 }
  0xfc   : > { %v402_v42 = vsel %vm386_vm2, %v378_v27, %v394_v37  ;;  %v404_v43 = vsel %vm388_vm3, %v380_v28, %v396_v38  ;;  %v382_v44 = vadd.f32 %v376_v39, %v362_v29  ;;  %v384_v45 = vadd.f32 %v376_v39, %v364_v30 }
  0xfd   : > { %v403_v46 = vsel %vm387_vm4, %v379_v33, %v395_v40  ;;  %v405_v47 = vsel %vm389_vm5, %v381_v34, %v397_v41  ;;  %v383_v48 = vadd.f32 %v376_v39, %v363_v35  ;;  %v385_v49 = vadd.f32 %v376_v39, %v365_v36 }
  0xfe   : > { %v572_v50 = vpack.c.bf16 %v403_v46, %v402_v42  ;;  %v573_v51 = vpack.c.bf16 %v405_v47, %v404_v43  ;;  %vm390_vm6 = vcmp.ge.f32.partialorder %v382_v44, 0.0  ;;  %v398_v52 = vmul.f32 0.1, %v382_v44 }
  0xff   : > { %vm392_vm7 = vcmp.ge.f32.partialorder %v384_v45, 0.0  ;;  %v400_v53 = vmul.f32 0.1, %v384_v45  ;;  %vm391_vm8 = vcmp.ge.f32.partialorder %v383_v48, 0.0  ;;  %v399_v54 = vmul.f32 0.1, %v383_v48 }
 0x100   : > { %434 = vst [vmem:[%s211_s15] sm:$0xff] %v572_v50  ;;  %435 = vst [vmem:[%s211_s15 + $0x8] sm:$0xff] %v573_v51  ;;  %v406_v55 = vsel %vm390_vm6, %v382_v44, %v398_v52  ;;  %vm393_vm9 = vcmp.ge.f32.partialorder %v385_v49, 0.0  ;;  %v401_v56 = vmul.f32 0.1, %v385_v49  ;;  %444 = sbr.rel (!%p766_p5) target bundleno = 270 (0x10e), region = 40 }
 0x101   : > { %v408_v57 = vsel %vm392_vm7, %v384_v45, %v400_v53  ;;  %v407_v58 = vsel %vm391_vm8, %v383_v48, %v399_v54 }
 0x102   : > { %v574_v59 = vpack.c.bf16 %v407_v58, %v406_v55  ;;  %v409_v60 = vsel %vm393_vm9, %v385_v49, %v401_v56 }
 0x103   : > { %v575_v61 = vpack.c.bf16 %v409_v60, %v408_v57 }
 0x104   : > { %436 = vst [vmem:[%s211_s15 + $0x10] sm:$0xff] %v574_v59 }
 0x105   : > { %437 = vst [vmem:[%s211_s15 + $0x18] sm:$0xff] %v575_v61 }
 0x107   : > { %v462_v62 = vld [vmem:[%s211_s15] sm:$0xff]  ;;  %v464_v63 = vld [vmem:[%s211_s15 + $0x8] sm:$0xff] }
 0x108   : > { %463 = vst [vmem:[%s449_s24] sm:$0xff] %v462_v62  ;;  %465 = vst [vmem:[%s449_s24 + $0x8] sm:$0xff] %v464_v63 }
 0x10b   : > { %v466_v0 = vld [vmem:[%s211_s15 + $0x10] sm:$0xff] }
 0x10c   : > { %v468_v1 = vld [vmem:[%s211_s15 + $0x18] sm:$0xff]  ;;  %467 = vst [vmem:[%s449_s24 + $0x20] sm:$0xff] %v466_v0 }
 0x10d   : > { %469 = vst [vmem:[%s449_s24 + $0x28] sm:$0xff] %v468_v1 }
 0x10e PF: > { %s14_s21 = sadd.s32 1, %s694_s21   ;;  %s838_s15 = smov %s674_s16 }
 0x10f   : > { %p11_p11 = scmp.ge.s32.totalorder %s14_s21, 6   ;;  %s839_s16 = smov %s777_s30 }
 0x110   : > { %s840_s17 = smov %s686_s19  ;;  %s841_s18 = smov %s690_s20 }
 0x111   : > { %s842_s19 = smov %s845_s22  ;;  %s843_s20 = smov %s849_s23 }
 0x112   :  { %13 = sbr.rel (!%p11_p11) target bundleno = 4 (0x4), region = 89 }

// kernel: fpn_forward.3
= control target key start
LH: loop header
LB: loop body
LE: loop exit
PB: predicated region body
PF: predicated region fallthrough
CT: control target
= control target key end

     0   :  { %s3731_s18 = smov 0   ;;  %s4562_s0 = inlined_call_operand.vmem [shape: bf16[2,16,1280], index: 0, kind: input, shape index: {}]   ;;  %s4563_s1 = inlined_call_operand.vmem [shape: bf16[2,16,1280], index: 1, kind: input, shape index: {}]   ;;  %s4564_s2 = inlined_call_operand.vmem [shape: bf16[9,16,16], index: 2, kind: input, shape index: {}]   ;;  %s4565_s3 = inlined_call_operand.vmem [shape: f32[16,1], index: 3, kind: input, shape index: {}]   ;;  %s4566_s4 = inlined_call_operand.vmem [shape: f32[16,1], index: 4, kind: input, shape index: {}]   ;;  %s4567_s5 = inlined_call_operand.vmem [shape: f32[2,16,1024], index: 5, kind: output, shape index: {}]  }
   0x1 LB: > { %s3273_s19 = sadd.s32 4294967295, %s3660_s18   ;;  %p3277_p0 = scmp.ge.s32.totalorder %s3660_s18, 1  ;;  %s3660_s18 = sphi %s3731_s18, %s15_s18  }
   0x2   : > { %p197_p1 = scmp.lt.s32.totalorder %s3660_s18, 3 }
   0x4   : > { %p198_p2 = pnand %p3277_p0, %p197_p1 }
   0x5   : > { %p230_p3 = scmp.lt.s32.totalorder (!%p198_p2), %s3273_s19, 1  ;;  %v3662_v0 = vmov (!%p198_p2), 0   ;;  %s3663_s27 = smov (!%p198_p2), 127   ;;  %v3791_v31 = vld [vmem:[%s4564_s2] sm:$0xff] (!%p198_p2)   ;;  %vm359_vm0 = vcmask (!%p198_p2), 130048   ;;  %v3664_v38 = vmov (!%p198_p2), 0.0  }
   0x6   : > { %201 = sbr.rel (%p198_p2) target bundleno = 793 (0x319), region = 40  ;;  %711 = vmatprep.mubr.bf16.mxu0 (!%p198_p2), %v3662_v0  ;;  %395 = vmatprep.mubr.bf16.mxu1 (!%p198_p2), %v3662_v0  ;;  %vm3665_vm1 = vmmov (!%p198_p2), 0   ;;  %s3666_s30 = smov (!%p198_p2), 126   ;;  %vm341_vm2 = vcmask (!%p198_p2), 1039360   ;;  %v3918_v49 = vld [vmem:[%s4564_s2 + $0x8] sm:$0xff] (!%p198_p2)   ;;  %vm832_vm3 = vcmask (!%p198_p2), 1031168  }
   0x7   : > { %3643 = vset.pattern.permute.xlu1 (!%p198_p2), %v3662_v0  ;;  %3644 = vset.pattern.permute.xlu0 (!%p198_p2), %v3662_v0  ;;  %s3667_s6 = smov (!%p198_p2), 94   ;;  %s3668_s7 = smov (!%p198_p2), 93   ;;  %v3941_v58 = vld [vmem:[%s4564_s2 + $0x10] sm:$0xff] (!%p198_p2)   ;;  %vm1110_vm4 = vcmask (!%p198_p2), 769024   ;;  %vm1388_vm5 = vcmask (!%p198_p2), 760832   ;;  %vm1666_vm6 = vcmask (!%p198_p2), 752640  }
   0x8   : > { %s3669_s8 = smov (!%p198_p2), 92   ;;  %s3670_s9 = smov (!%p198_p2), 60   ;;  %vm1949_vm7 = vcmask (!%p198_p2), 490496   ;;  %vm2230_vm8 = vcmask (!%p198_p2), 482304   ;;  %vm2511_vm9 = vcmask (!%p198_p2), 474112   ;;  %vm2878_vm11 = vcmask (!%p198_p2), 261120  }
   0x9   : > { %s3671_s10 = smov (!%p198_p2), 59   ;;  %s3672_s15 = smov (!%p198_p2), 58  }
   0xa   : > { %s3674_s22 = smov (!%p198_p2), 122   ;;  %s3676_s24 = smov (!%p198_p2), 118  }
   0xb   : > { %s3677_s25 = smov (!%p198_p2), 116   ;;  %s3681_s28 = smov (!%p198_p2), 90  }
   0xc   : > { %s3682_s29 = smov (!%p198_p2), 88   ;;  %s3688_s11 = smov (!%p198_p2), 108  }
   0xd   : > { %s4569_s19 = smov (!%p230_p3, %s3273_s19), 1  ;;  %s3689_s12 = smov 104  }
   0xe   : > { %s3595_s20 = smul.u32 80, %s4569_s19  ;;  %s3364_s16 = sshll.u32 %s4569_s19, 7 }
   0xf   : > { %s4295_s21 = scalar_lea.vmem %s4567_s5, %s3364_s16  ;;  %s3673_s19 = smov 124  }
  0x10   : > { %s3749_s23 = scalar_lea.vmem %s4562_s0, %s3595_s20  ;;  %s3754_s26 = scalar_lea.vmem %s4563_s1, %s3595_s20 }
  0x11   : > { %v246_v1 = vld [vmem:[%s3749_s23] sm:$0xff]  ;;  %v251_v2 = vld [vmem:[%s3749_s23 + $0x28] sm:$0xff]  ;;  %v252_v7 = vld [vmem:[%s3749_s23 + $0x30] sm:$0xff]  ;;  %s3690_s13 = smov 102   ;;  %s3691_s14 = smov 68  }
  0x12   : > { %v256_v3 = vld [vmem:[%s3754_s26] sm:$0xff]  ;;  %v261_v4 = vld [vmem:[%s3754_s26 + $0x28] sm:$0xff]  ;;  %v262_v10 = vld [vmem:[%s3754_s26 + $0x30] sm:$0xff]  ;;  %s3693_s16 = smov 80   ;;  %s3694_s17 = smov 78  }
  0x13   : > { %v266_v5 = vadd.bf16 %v256_v3, %v246_v1  ;;  %v247_v6 = vld [vmem:[%s3749_s23 + $0x8] sm:$0xff]  ;;  %v271_v8 = vadd.bf16 %v261_v4, %v251_v2  ;;  %v248_v11 = vld [vmem:[%s3749_s23 + $0x10] sm:$0xff]  ;;  %v272_v13 = vadd.bf16 %v262_v10, %v252_v7  ;;  %v253_v14 = vld [vmem:[%s3749_s23 + $0x38] sm:$0xff]  ;;  %s3695_s20 = smov 76  }
  0x14   : > { %v257_v9 = vld [vmem:[%s3754_s26 + $0x8] sm:$0xff]  ;;  %v258_v15 = vld [vmem:[%s3754_s26 + $0x10] sm:$0xff]  ;;  %v263_v16 = vld [vmem:[%s3754_s26 + $0x38] sm:$0xff] }
  0x15   : > { %v267_v12 = vadd.bf16 %v257_v9, %v247_v6  ;;  %v3768_v17 = vcombine.high %v266_v5, %v271_v8  ;;  %v3770_v18 = vcombine.low %v266_v5, %v271_v8  ;;  %v268_v19 = vadd.bf16 %v258_v15, %v248_v11  ;;  %v250_v21 = vld [vmem:[%s3749_s23 + $0x20] sm:$0xff]  ;;  %v255_v22 = vld [vmem:[%s3749_s23 + $0x48] sm:$0xff]  ;;  %v249_v33 = vld [vmem:[%s3749_s23 + $0x18] sm:$0xff] }
  0x16   : > { %v273_v20 = vadd.bf16 %v263_v16, %v253_v14  ;;  %v260_v26 = vld [vmem:[%s3754_s26 + $0x20] sm:$0xff]  ;;  %v265_v27 = vld [vmem:[%s3754_s26 + $0x48] sm:$0xff]  ;;  %v259_v35 = vld [vmem:[%s3754_s26 + $0x18] sm:$0xff] }
  0x17   : > { %325 = vrot.lane.b32.xlu0 %v3768_v17, %s3663_s27  ;;  %323 = vrot.lane.b32.xlu1 %v3770_v18, %s3663_s27  ;;  %v3778_v23 = vcombine.low %v267_v12, %v272_v13  ;;  %v3780_v24 = vcombine.high %v267_v12, %v272_v13  ;;  %v270_v29 = vadd.bf16 %v260_v26, %v250_v21  ;;  %v254_v34 = vld [vmem:[%s3749_s23 + $0x40] sm:$0xff]  ;;  %s3675_s23 = smov 120  }
  0x18   : > { %v3782_v25 = vcombine.high %v268_v19, %v273_v20  ;;  %v3786_v28 = vcombine.low %v268_v19, %v273_v20  ;;  %v275_v30 = vadd.bf16 %v265_v27, %v255_v22  ;;  %v264_v36 = vld [vmem:[%s3754_s26 + $0x40] sm:$0xff]  ;;  %v269_v39 = vadd.bf16 %v259_v35, %v249_v33  ;;  %s3679_s26 = smov 98  }
  0x19   : > { %v274_v40 = vadd.bf16 %v264_v36, %v254_v34  ;;  %v2794_v33 = vld [vmem:[%s4566_s4] sm:$0xff] }
  0x1a   : > { %679 = vmatprep.subr.bf16.mxu0 %v3782_v25  ;;  %v3795_v32 = vcombine.high %v270_v29, %v275_v30  ;;  %v3805_v37 = vcombine.low %v270_v29, %v275_v30  ;;  %v2764_v29 = vld [vmem:[%s4565_s3] sm:$0xff] }
  0x1b   : > { %680 = vmatpush1.bf16.msra.mxu0 %v3786_v28  ;;  %327 = vrot.lane.b32.xlu0 %v3778_v23, %s3663_s27  ;;  %v3821_v41 = vcombine.low %v269_v39, %v274_v40  ;;  %v3834_v42 = vcombine.high %v269_v39, %v274_v40  ;;  %v2795_v40 = vld [vmem:[%s4566_s4 + $0x8] sm:$0xff] }
  0x1c   : > { %329 = vrot.lane.b32.xlu1 %v3780_v24, %s3663_s27  ;;  %3389 = vmatprep.subr.bf16.mxu0 %v3664_v38 }
  0x1e   : > { %3302 = vmatmul.mubr.msk.bf16.vlgmr.msra.gmra.mrb[0].mxu0 %vm359_vm0, %v3791_v31 }
  0x1f   : > { %3390 = vmatpush3.bf16.msra.mxu0 %v3805_v37  ;;  %3391 = vmatprep.mubr.msk.bf16.mxu0 %vm3665_vm1, %v3664_v38 }
  0x20   : > { %331 = vrot.lane.b32.xlu0 %v3786_v28, %s3663_s27  ;;  %816 = vrot.lane.b32.xlu1 %v3768_v17, %s3666_s30 }
  0x24   : > { %818 = vrot.lane.b32.xlu0 %v3778_v23, %s3666_s30  ;;  %814 = vrot.lane.b32.xlu1 %v3770_v18, %s3666_s30 }
  0x26   : > { %3392 = vmatmul.mubr.msk.bf16.vlgmr.msra.gmra.mrb[4].mxu0 %vm359_vm0, %v3791_v31 }
  0x27   : > { %885 = vmatprep.mubr.bf16.mxu0 %v3662_v0 }
  0x28   : > { %333 = vrot.lane.b32.xlu0 %v3782_v25, %s3663_s27  ;;  %335 = vrot.lane.b32.xlu1 %v3821_v41, %s3663_s27 }
  0x2c   : > { %824 = vrot.lane.b32.xlu0 %v3782_v25, %s3666_s30  ;;  %826 = vrot.lane.b32.xlu1 %v3821_v41, %s3666_s30 }
  0x30   : > { %822 = vrot.lane.b32.xlu0 %v3786_v28, %s3666_s30  ;;  %337 = vrot.lane.b32.xlu1 %v3834_v42, %s3663_s27 }
  0x34   : > { %339 = vrot.lane.b32.xlu0 %v3805_v37, %s3663_s27  ;;  %830 = vrot.lane.b32.xlu1 %v3805_v37, %s3666_s30  ;;  %s3680_s27 = smov 96  }
  0x38   : > { %1094 = vrot.lane.b32.xlu0 %v3768_v17, %s3667_s6  ;;  %1096 = vrot.lane.b32.xlu1 %v3778_v23, %s3667_s6 }
  0x3c   : > { %1092 = vrot.lane.b32.xlu0 %v3770_v18, %s3667_s6  ;;  %1102 = vrot.lane.b32.xlu1 %v3782_v25, %s3667_s6 }
  0x40   : > { %1104 = vrot.lane.b32.xlu0 %v3821_v41, %s3667_s6  ;;  %1100 = vrot.lane.b32.xlu1 %v3786_v28, %s3667_s6 }
  0x44   : > { %1108 = vrot.lane.b32.xlu0 %v3805_v37, %s3667_s6  ;;  %1372 = vrot.lane.b32.xlu1 %v3768_v17, %s3668_s7 }
  0x48   : > { %1374 = vrot.lane.b32.xlu0 %v3778_v23, %s3668_s7  ;;  %1370 = vrot.lane.b32.xlu1 %v3770_v18, %s3668_s7 }
  0x4c   : > { %820 = vrot.lane.b32.xlu0 %v3780_v24, %s3666_s30  ;;  %1380 = vrot.lane.b32.xlu1 %v3782_v25, %s3668_s7 }
  0x50   : > { %1382 = vrot.lane.b32.xlu0 %v3821_v41, %s3668_s7  ;;  %1378 = vrot.lane.b32.xlu1 %v3786_v28, %s3668_s7 }
  0x54   : > { %828 = vrot.lane.b32.xlu0 %v3834_v42, %s3666_s30  ;;  %1386 = vrot.lane.b32.xlu1 %v3805_v37, %s3668_s7 }
  0x58   : > { %1098 = vrot.lane.b32.xlu0 %v3780_v24, %s3667_s6  ;;  %1650 = vrot.lane.b32.xlu1 %v3768_v17, %s3669_s8 }
  0x5c   : > { %1652 = vrot.lane.b32.xlu0 %v3778_v23, %s3669_s8  ;;  %1648 = vrot.lane.b32.xlu1 %v3770_v18, %s3669_s8 }
  0x60   : > { %1106 = vrot.lane.b32.xlu0 %v3834_v42, %s3667_s6  ;;  %1658 = vrot.lane.b32.xlu1 %v3782_v25, %s3669_s8 }
  0x64   : > { %1660 = vrot.lane.b32.xlu0 %v3821_v41, %s3669_s8  ;;  %1656 = vrot.lane.b32.xlu1 %v3786_v28, %s3669_s8 }
  0x68   : > { %1376 = vrot.lane.b32.xlu0 %v3780_v24, %s3668_s7  ;;  %1664 = vrot.lane.b32.xlu1 %v3805_v37, %s3669_s8 }
  0x6c   : > { %1384 = vrot.lane.b32.xlu0 %v3834_v42, %s3668_s7  ;;  %1931 = vrot.lane.b32.xlu1 %v3768_v17, %s3670_s9  ;;  %s3683_s7 = smov 86  }
  0x70   : > { %1933 = vrot.lane.b32.xlu0 %v3778_v23, %s3670_s9  ;;  %1929 = vrot.lane.b32.xlu1 %v3770_v18, %s3670_s9 }
  0x74   : > { %1654 = vrot.lane.b32.xlu0 %v3780_v24, %s3669_s8  ;;  %1939 = vrot.lane.b32.xlu1 %v3782_v25, %s3670_s9 }
  0x78   : > { %1941 = vrot.lane.b32.xlu0 %v3821_v41, %s3670_s9  ;;  %1937 = vrot.lane.b32.xlu1 %v3786_v28, %s3670_s9 }
  0x7c   : > { %1662 = vrot.lane.b32.xlu0 %v3834_v42, %s3669_s8  ;;  %1945 = vrot.lane.b32.xlu1 %v3805_v37, %s3670_s9 }
  0x80   : > { %1935 = vrot.lane.b32.xlu1 %v3780_v24, %s3670_s9  ;;  %1947 = vrot.lane.b32.xlu0 %v3795_v32, %s3670_s9 }
  0x84   : > { %2214 = vrot.lane.b32.xlu1 %v3778_v23, %s3671_s10  ;;  %2212 = vrot.lane.b32.xlu0 %v3768_v17, %s3671_s10 }
  0x88   : > { %1943 = vrot.lane.b32.xlu1 %v3834_v42, %s3670_s9  ;;  %2210 = vrot.lane.b32.xlu0 %v3770_v18, %s3671_s10  ;;  %s3684_s9 = smov 84  }
  0x89   : > { %v326_v43 = vpop.permute.xlu0 %325  ;;  %v324_v44 = vpop.permute.xlu1 %323 }
  0x8a   : > { %v342_v48 = vsel %vm341_vm2, %v324_v44, %v326_v43 }
  0x8c   : > { %2220 = vrot.lane.b32.xlu0 %v3782_v25, %s3671_s10  ;;  %2222 = vrot.lane.b32.xlu1 %v3821_v41, %s3671_s10 }
  0x8d   : > { %v328_v45 = vpop.permute.xlu0 %327 }
  0x8e   : > { %v330_v46 = vpop.permute.xlu1 %329  ;;  %v343_v47 = vsel %vm341_vm2, %v326_v43, %v328_v45  ;;  %v4079_v43 = vld [vmem:[%s4564_s2 + $0x20] sm:$0xff]  }
  0x8f   : > { %363 = vmatprep.subr.bf16.mxu1 %v343_v47  ;;  %v344_v53 = vsel %vm341_vm2, %v328_v45, %v330_v46 }
  0x90   : > { %2218 = vrot.lane.b32.xlu0 %v3786_v28, %s3671_s10  ;;  %364 = vmatpush1.bf16.msra.mxu1 %v342_v48 }
  0x91   : > { %2216 = vrot.lane.b32.xlu1 %v3780_v24, %s3671_s10 }
  0x92   : > { %v332_v50 = vpop.permute.xlu0 %331  ;;  %v817_v51 = vpop.permute.xlu1 %816 }
  0x93   : > { %v345_v52 = vsel %vm341_vm2, %v330_v46, %v332_v50  ;;  %3294 = vmatmul.mubr.msk.bf16.vlgmr.msra.gmra.mrb[0].mxu1 %vm359_vm0, %v3918_v49 }
  0x94   : > { %406 = vmatprep.subr.bf16.mxu1 %v345_v52  ;;  %438 = vmatprep.mubr.bf16.mxu1 %v3662_v0 }
  0x95   : > { %407 = vmatpush1.bf16.msra.mxu1 %v344_v53  ;;  %2226 = vrot.lane.b32.xlu0 %v3805_v37, %s3671_s10 }
  0x96   : > { %v3929_v54 = vpop.permute.xlu0 %818  ;;  %v815_v55 = vpop.permute.xlu1 %814  ;;  %2228 = vrot.lane.b32.xlu1 %v3795_v32, %s3671_s10 }
  0x97   : > { %v833_v56 = vsel %vm832_vm3, %v815_v55, %v817_v51  ;;  %v834_v57 = vsel %vm832_vm3, %v817_v51, %v3929_v54 }
  0x98   : > { %853 = vmatprep.subr.bf16.mxu0 %v834_v57 }
  0x99   : > { %854 = vmatpush1.bf16.msra.mxu0 %v833_v56  ;;  %2224 = vrot.lane.b32.xlu0 %v3834_v42, %s3671_s10  ;;  %s3686_s10 = smov 106  }
  0x9a   : > { %v334_v59 = vpop.permute.xlu0 %333  ;;  %v336_v60 = vpop.permute.xlu1 %335  ;;  %2493 = vrot.lane.b32.xlu1 %v3768_v17, %s3672_s15 }
  0x9b   : > { %v347_v61 = vsel %vm341_vm2, %v334_v59, %v336_v60  ;;  %v346_v62 = vsel %vm341_vm2, %v332_v50, %v334_v59  ;;  %3295 = vmatmul.mubr.msk.bf16.vlgmr.msra.gmra.mrb[4].mxu1 %vm359_vm0, %v3918_v49 }
  0x9c   : > { %449 = vmatprep.subr.bf16.mxu1 %v347_v61  ;;  %3308 = vmatmul.mubr.msk.bf16.vlgmr.msra.gmra.mrb[8].mxu0 %vm359_vm0, %v3941_v58 }
  0x9d   : > { %450 = vmatpush1.bf16.msra.mxu1 %v346_v62  ;;  %481 = vmatprep.mubr.bf16.mxu1 %v3662_v0 }
  0x9e   : > { %v825_v63 = vpop.permute.xlu0 %824  ;;  %v3953_v1 = vpop.permute.xlu1 %826  ;;  %971 = vmatprep.mubr.bf16.mxu0 %v3662_v0  ;;  %2495 = vrot.lane.b32.xlu0 %v3778_v23, %s3672_s15 }
  0x9f   : > { %v838_v2 = vsel %vm832_vm3, %v825_v63, %v3953_v1  ;;  %2491 = vrot.lane.b32.xlu1 %v3770_v18, %s3672_s15 }
  0xa0   : > { %939 = vmatprep.subr.bf16.mxu0 %v838_v2  ;;  %v4132_v2 = vld [vmem:[%s4564_s2 + $0x28] sm:$0xff]  }
  0xa2   : > { %v3963_v3 = vpop.permute.xlu0 %822  ;;  %v338_v4 = vpop.permute.xlu1 %337  ;;  %2497 = vrot.lane.b32.xlu0 %v3780_v24, %s3672_s15 }
  0xa3   : > { %v837_v5 = vsel %vm832_vm3, %v3963_v3, %v825_v63  ;;  %2499 = vrot.lane.b32.xlu1 %v3786_v28, %s3672_s15  ;;  %3296 = vmatmul.mubr.msk.bf16.vlgmr.msra.gmra.mrb[8].mxu1 %vm359_vm0, %v3918_v49  ;;  %v348_v9 = vsel %vm341_vm2, %v336_v60, %v338_v4 }
  0xa4   : > { %940 = vmatpush1.bf16.msra.mxu0 %v837_v5  ;;  %524 = vmatprep.mubr.bf16.mxu1 %v3662_v0 }
  0xa5   : > { %3395 = vmatprep.subr.bf16.mxu0 %v3664_v38 }
  0xa6   : > { %v340_v6 = vpop.permute.xlu0 %339  ;;  %v3975_v7 = vpop.permute.xlu1 %830  ;;  %2501 = vrot.lane.b32.xlu0 %v3782_v25, %s3672_s15 }
  0xa7   : > { %3310 = vmatmul.mubr.msk.bf16.vlgmr.msra.gmra.mrb[0].mxu0 %vm359_vm0, %v3941_v58  ;;  %v349_v8 = vsel %vm341_vm2, %v338_v4, %v340_v6  ;;  %2503 = vrot.lane.b32.xlu1 %v3821_v41, %s3672_s15 }
  0xa8   : > { %492 = vmatprep.subr.bf16.mxu1 %v349_v8  ;;  %3396 = vmatpush3.bf16.msra.mxu0 %v3975_v7 }
  0xa9   : > { %493 = vmatpush1.bf16.msra.mxu1 %v348_v9  ;;  %3397 = vmatprep.mubr.msk.bf16.mxu0 %vm3665_vm1, %v3664_v38 }
  0xaa   : > { %v1095_v10 = vpop.permute.xlu0 %1094  ;;  %3383 = vmatprep.subr.bf16.mxu1 %v3664_v38  ;;  %v3987_v11 = vpop.permute.xlu1 %1096  ;;  %2505 = vrot.lane.b32.xlu0 %v3834_v42, %s3672_s15 }
  0xab   : > { %v1112_v12 = vsel %vm1110_vm4, %v1095_v10, %v3987_v11  ;;  %2507 = vrot.lane.b32.xlu1 %v3805_v37, %s3672_s15 }
  0xac   : > { %3297 = vmatmul.mubr.msk.bf16.vlgmr.msra.gmra.mrb[12].mxu1 %vm359_vm0, %v3918_v49  ;;  %1131 = vmatprep.subr.bf16.mxu0 %v1112_v12 }
  0xad   : > { %3384 = vmatpush3.bf16.msra.mxu1 %v340_v6  ;;  %3385 = vmatprep.mubr.msk.bf16.mxu1 %vm3665_vm1, %v3664_v38 }
  0xae   : > { %v1093_v13 = vpop.permute.xlu0 %1092  ;;  %v1103_v14 = vpop.permute.xlu1 %1102  ;;  %593 = vmatprep.subr.bf16.mxu1 %v3768_v17  ;;  %2509 = vrot.lane.b32.xlu0 %v3795_v32, %s3672_s15  ;;  %v4015_v17 = vld [vmem:[%s4564_s2 + $0x18] sm:$0xff]   ;;  %s3692_s15 = smov 100  }
  0xaf   : > { %v1111_v15 = vsel %vm1110_vm4, %v1093_v13, %v1095_v10  ;;  %3398 = vmatmul.mubr.msk.bf16.vlgmr.msra.gmra.mrb[4].mxu0 %vm359_vm0, %v3941_v58  ;;  %2768 = vperm.xlu1 %3643, %v2764_v29  }
  0xb0   : > { %1132 = vmatpush1.bf16.msra.mxu0 %v1111_v15  ;;  %1163 = vmatprep.mubr.bf16.mxu0 %v3662_v0 }
  0xb2   : > { %v4008_v16 = vpop.permute.xlu0 %1104  ;;  %v4010_v19 = vpop.permute.xlu1 %1100 }
  0xb3   : > { %v1116_v20 = vsel %vm1110_vm4, %v1103_v14, %v4008_v16  ;;  %v1115_v21 = vsel %vm1110_vm4, %v4010_v19, %v1103_v14  ;;  %2798 = vperm.xlu1 %3643, %v2794_v33  }
  0xb4   : > { %3386 = vmatmul.mubr.msk.bf16.vlgmr.msra.gmra.mrb[16].mxu1 %vm359_vm0, %v3918_v49  ;;  %1217 = vmatprep.subr.bf16.mxu0 %v1116_v20 }
  0xb5   : > { %594 = vmatpush1.bf16.msra.mxu1 %v3770_v18  ;;  %625 = vmatprep.mubr.bf16.mxu1 %v3662_v0 }
  0xb6   : > { %v4025_v22 = vpop.permute.xlu0 %1108  ;;  %v1373_v25 = vpop.permute.xlu1 %1372  ;;  %636 = vmatprep.subr.bf16.mxu1 %v3780_v24 }
  0xb7   : > { %3316 = vmatmul.mubr.msk.bf16.vlgmr.msra.gmra.mrb[8].mxu0 %vm359_vm0, %v4015_v17  ;;  %2803 = vperm.xlu1 %3643, %v2795_v40  }
  0xb8   : > { %1218 = vmatpush1.bf16.msra.mxu0 %v1115_v21  ;;  %1249 = vmatprep.mubr.bf16.mxu0 %v3662_v0 }
  0xb9   : > { %3401 = vmatprep.subr.bf16.mxu0 %v3664_v38 }
  0xba   : > { %v4032_v26 = vpop.permute.xlu0 %1374  ;;  %v1371_v27 = vpop.permute.xlu1 %1370 }
  0xbb   : > { %v1390_v28 = vsel %vm1388_vm5, %v1373_v25, %v4032_v26  ;;  %v1389_v34 = vsel %vm1388_vm5, %v1371_v27, %v1373_v25 }
  0xbc   : > { %3300 = vmatmul.mubr.msk.bf16.vlgmr.msra.gmra.mrb[0].mxu1 %vm359_vm0, %v3791_v31 }
  0xbd   : > { %637 = vmatpush1.bf16.msra.mxu1 %v3778_v23  ;;  %668 = vmatprep.mubr.bf16.mxu1 %v3662_v0  ;;  %v2765_v23 = vld [vmem:[%s4565_s3 + $0x8] sm:$0xff] }
  0xbe   : > { %v821_v18 = vpop.permute.xlu0 %820  ;;  %722 = vmatprep.subr.bf16.mxu1 %v3834_v42  ;;  %v1381_v24 = vpop.permute.xlu1 %1380  ;;  %2773 = vperm.xlu0 %3644, %v2765_v23  }
  0xbf   : > { %3318 = vmatmul.mubr.msk.bf16.vlgmr.msra.gmra.mrb[0].mxu0 %vm359_vm0, %v4015_v17  ;;  %v836_v35 = vsel %vm832_vm3, %v821_v18, %v3963_v3  ;;  %v835_v44 = vsel %vm832_vm3, %v3929_v54, %v821_v18 }
  0xc0   : > { %3402 = vmatpush3.bf16.msra.mxu0 %v4025_v22  ;;  %3403 = vmatprep.mubr.msk.bf16.mxu0 %vm3665_vm1, %v3664_v38 }
  0xc1   : > { %1409 = vmatprep.subr.bf16.mxu0 %v1390_v28 }
  0xc2   : > { %v4052_v30 = vpop.permute.xlu0 %1382  ;;  %v4054_v32 = vpop.permute.xlu1 %1378 }
  0xc3   : > { %v1394_v39 = vsel %vm1388_vm5, %v1381_v24, %v4052_v30  ;;  %v1393_v46 = vsel %vm1388_vm5, %v4054_v32, %v1381_v24 }
  0xc4   : > { %3301 = vmatmul.mubr.msk.bf16.vlgmr.msra.gmra.mrb[4].mxu1 %vm359_vm0, %v3791_v31 }
  0xc5   : > { %723 = vmatpush1.bf16.msra.mxu1 %v3821_v41  ;;  %754 = vmatprep.mubr.bf16.mxu1 %v3662_v0 }
  0xc6   : > { %896 = vmatprep.subr.bf16.mxu1 %v836_v35  ;;  %v829_v36 = vpop.permute.xlu0 %828  ;;  %v4066_v37 = vpop.permute.xlu1 %1386 }
  0xc7   : > { %3404 = vmatmul.mubr.msk.bf16.vlgmr.msra.gmra.mrb[4].mxu0 %vm359_vm0, %v4015_v17  ;;  %v840_v45 = vsel %vm832_vm3, %v829_v36, %v3975_v7  ;;  %v839_v50 = vsel %vm832_vm3, %v3953_v1, %v829_v36 }
  0xc8   : > { %1410 = vmatpush1.bf16.msra.mxu0 %v1389_v34  ;;  %1441 = vmatprep.mubr.bf16.mxu0 %v3662_v0 }
  0xc9   : > { %1495 = vmatprep.subr.bf16.mxu0 %v1394_v39 }
  0xca   : > { %v1099_v41 = vpop.permute.xlu0 %1098  ;;  %v1651_v42 = vpop.permute.xlu1 %1650 }
  0xcb   : > { %v1114_v51 = vsel %vm1110_vm4, %v1099_v41, %v4010_v19  ;;  %v1113_v57 = vsel %vm1110_vm4, %v3987_v11, %v1099_v41 }
  0xcc   : > { %3303 = vmatmul.mubr.msk.bf16.vlgmr.msra.gmra.mrb[12].mxu1 %vm359_vm0, %v3791_v31 }
  0xcd   : > { %897 = vmatpush1.bf16.msra.mxu1 %v835_v44  ;;  %928 = vmatprep.mubr.bf16.mxu1 %v3662_v0 }
  0xce   : > { %982 = vmatprep.subr.bf16.mxu1 %v840_v45  ;;  %v4090_v47 = vpop.permute.xlu0 %1652  ;;  %v1649_v48 = vpop.permute.xlu1 %1648 }
  0xcf   : > { %3324 = vmatmul.mubr.msk.bf16.vlgmr.msra.gmra.mrb[8].mxu0 %vm359_vm0, %v4079_v43  ;;  %v1668_v54 = vsel %vm1666_vm6, %v1651_v42, %v4090_v47  ;;  %v1667_v59 = vsel %vm1666_vm6, %v1649_v48, %v1651_v42 }
  0xd0   : > { %1496 = vmatpush1.bf16.msra.mxu0 %v1393_v46  ;;  %1527 = vmatprep.mubr.bf16.mxu0 %v3662_v0  ;;  %v3652_v46 = vld [vmem:[%s4564_s2 + $0x38] sm:$0xff]  }
  0xd1   : > { %3407 = vmatprep.subr.bf16.mxu0 %v3664_v38 }
  0xd2   : > { %v1107_v31 = vpop.permute.xlu0 %1106  ;;  %v1659_v49 = vpop.permute.xlu1 %1658 }
  0xd3   : > { %v1118_v60 = vsel %vm1110_vm4, %v1107_v31, %v4025_v22  ;;  %v1117_v3 = vsel %vm1110_vm4, %v4008_v16, %v1107_v31 }
  0xd4   : > { %3309 = vmatmul.mubr.msk.bf16.vlgmr.msra.gmra.mrb[4].mxu1 %vm359_vm0, %v3941_v58 }
  0xd5   : > { %983 = vmatpush1.bf16.msra.mxu1 %v839_v50  ;;  %1014 = vmatprep.mubr.bf16.mxu1 %v3662_v0 }
  0xd6   : > { %1174 = vmatprep.subr.bf16.mxu1 %v1114_v51  ;;  %v4103_v52 = vpop.permute.xlu0 %1660  ;;  %v1657_v53 = vpop.permute.xlu1 %1656 }
  0xd7   : > { %3326 = vmatmul.mubr.msk.bf16.vlgmr.msra.gmra.mrb[0].mxu0 %vm359_vm0, %v4079_v43  ;;  %v1672_v63 = vsel %vm1666_vm6, %v1659_v49, %v4103_v52  ;;  %v1671_v5 = vsel %vm1666_vm6, %v1657_v53, %v1659_v49 }
  0xd8   : > { %3408 = vmatpush3.bf16.msra.mxu0 %v4066_v37  ;;  %3409 = vmatprep.mubr.msk.bf16.mxu0 %vm3665_vm1, %v3664_v38 }
  0xd9   : > { %1687 = vmatprep.subr.bf16.mxu0 %v1668_v54 }
  0xda   : > { %v1377_v55 = vpop.permute.xlu0 %1376  ;;  %v4112_v56 = vpop.permute.xlu1 %1664 }
  0xdb   : > { %v1392_v4 = vsel %vm1388_vm5, %v1377_v55, %v4054_v32  ;;  %v1391_v10 = vsel %vm1388_vm5, %v4032_v26, %v1377_v55  ;;  %v4179_v26 = vld [vmem:[%s4564_s2 + $0x30] sm:$0xff]  }
  0xdc   : > { %3311 = vmatmul.mubr.msk.bf16.vlgmr.msra.gmra.mrb[12].mxu1 %vm359_vm0, %v3941_v58 }
  0xdd   : > { %1175 = vmatpush1.bf16.msra.mxu1 %v1113_v57  ;;  %1206 = vmatprep.mubr.bf16.mxu1 %v3662_v0 }
  0xde   : > { %1260 = vmatprep.subr.bf16.mxu1 %v1118_v60  ;;  %v1385_v61 = vpop.permute.xlu0 %1384  ;;  %v1932_v62 = vpop.permute.xlu1 %1931 }
  0xdf   : > { %3410 = vmatmul.mubr.msk.bf16.vlgmr.msra.gmra.mrb[4].mxu0 %vm359_vm0, %v4079_v43  ;;  %v1396_v11 = vsel %vm1388_vm5, %v1385_v61, %v4066_v37  ;;  %v1395_v19 = vsel %vm1388_vm5, %v4052_v30, %v1385_v61 }
  0xe0   : > { %1688 = vmatpush1.bf16.msra.mxu0 %v1667_v59  ;;  %1719 = vmatprep.mubr.bf16.mxu0 %v3662_v0 }
  0xe1   : > { %1773 = vmatprep.subr.bf16.mxu0 %v1672_v63 }
  0xe2   : > { %v4127_v58 = vpop.permute.xlu0 %1933  ;;  %v1930_v1 = vpop.permute.xlu1 %1929 }
  0xe3   : > { %v1951_v14 = vsel %vm1949_vm7, %v1932_v62, %v4127_v58 }
  0xe4   : > { %3317 = vmatmul.mubr.msk.bf16.vlgmr.msra.gmra.mrb[4].mxu1 %vm359_vm0, %v4015_v17 }
  0xe5   : > { %1261 = vmatpush1.bf16.msra.mxu1 %v1117_v3  ;;  %1292 = vmatprep.mubr.bf16.mxu1 %v3662_v0 }
  0xe6   : > { %1452 = vmatprep.subr.bf16.mxu1 %v1392_v4  ;;  %v1655_v6 = vpop.permute.xlu0 %1654  ;;  %v1940_v7 = vpop.permute.xlu1 %1939  ;;  %v3653_v4 = vld [vmem:[%s4564_s2 + $0x40] sm:$0xff]  }
  0xe7   : > { %3332 = vmatmul.mubr.msk.bf16.vlgmr.msra.gmra.mrb[8].mxu0 %vm359_vm0, %v4132_v2  ;;  %v1670_v20 = vsel %vm1666_vm6, %v1655_v6, %v1657_v53  ;;  %v1669_v27 = vsel %vm1666_vm6, %v4090_v47, %v1655_v6 }
  0xe8   : > { %1774 = vmatpush1.bf16.msra.mxu0 %v1671_v5  ;;  %1805 = vmatprep.mubr.bf16.mxu0 %v3662_v0 }
  0xe9   : > { %3413 = vmatprep.subr.bf16.mxu0 %v3664_v38 }
  0xea   : > { %v4146_v8 = vpop.permute.xlu0 %1941  ;;  %v1938_v9 = vpop.permute.xlu1 %1937 }
  0xeb   : > { %v1955_v21 = vsel %vm1949_vm7, %v1940_v7, %v4146_v8  ;;  %v1954_v28 = vsel %vm1949_vm7, %v1938_v9, %v1940_v7 }
  0xec   : > { %3319 = vmatmul.mubr.msk.bf16.vlgmr.msra.gmra.mrb[12].mxu1 %vm359_vm0, %v4015_v17  ;;  %v1950_v17 = vsel %vm1949_vm7, %v1930_v1, %v1932_v62 }
  0xed   : > { %1453 = vmatpush1.bf16.msra.mxu1 %v1391_v10  ;;  %1484 = vmatprep.mubr.bf16.mxu1 %v3662_v0 }
  0xee   : > { %1538 = vmatprep.subr.bf16.mxu1 %v1396_v11  ;;  %v1663_v12 = vpop.permute.xlu0 %1662  ;;  %v1946_v13 = vpop.permute.xlu1 %1945 }
  0xef   : > { %3334 = vmatmul.mubr.msk.bf16.vlgmr.msra.gmra.mrb[0].mxu0 %vm359_vm0, %v4132_v2  ;;  %v1674_v24 = vsel %vm1666_vm6, %v1663_v12, %v4112_v56  ;;  %v1673_v33 = vsel %vm1666_vm6, %v4103_v52, %v1663_v12 }
  0xf0   : > { %3414 = vmatpush3.bf16.msra.mxu0 %v4112_v56  ;;  %3415 = vmatprep.mubr.msk.bf16.mxu0 %vm3665_vm1, %v3664_v38 }
  0xf1   : > { %1971 = vmatprep.subr.bf16.mxu0 %v1951_v14 }
  0xf2   : > { %v1936_v15 = vpop.permute.xlu1 %1935  ;;  %v1948_v16 = vpop.permute.xlu0 %1947 }
  0xf3   : > { %v1953_v32 = vsel %vm1949_vm7, %v1936_v15, %v1938_v9  ;;  %v1958_v34 = vsel %vm1949_vm7, %v1946_v13, %v1948_v16  ;;  %v1952_v39 = vsel %vm1949_vm7, %v4127_v58, %v1936_v15 }
  0xf4   : > { %3325 = vmatmul.mubr.msk.bf16.vlgmr.msra.gmra.mrb[4].mxu1 %vm359_vm0, %v4079_v43 }
  0xf5   : > { %1539 = vmatpush1.bf16.msra.mxu1 %v1395_v19  ;;  %1570 = vmatprep.mubr.bf16.mxu1 %v3662_v0 }
  0xf6   : > { %1730 = vmatprep.subr.bf16.mxu1 %v1670_v20  ;;  %v2213_v22 = vpop.permute.xlu0 %2212  ;;  %v4173_v25 = vpop.permute.xlu1 %2214 }
  0xf7   : > { %3416 = vmatmul.mubr.msk.bf16.vlgmr.msra.gmra.mrb[4].mxu0 %vm359_vm0, %v4132_v2  ;;  %v2232_v35 = vsel %vm2230_vm8, %v2213_v22, %v4173_v25 }
  0xf8   : > { %1972 = vmatpush1.bf16.msra.mxu0 %v1950_v17  ;;  %2003 = vmatprep.mubr.bf16.mxu0 %v3662_v0 }
  0xf9   : > { %2057 = vmatprep.subr.bf16.mxu0 %v1955_v21 }
  0xfa   : > { %v2211_v18 = vpop.permute.xlu0 %2210  ;;  %v1944_v29 = vpop.permute.xlu1 %1943 }
  0xfb   : > { %v2231_v41 = vsel %vm2230_vm8, %v2211_v18, %v2213_v22  ;;  %v1957_v42 = vsel %vm1949_vm7, %v1944_v29, %v1946_v13  ;;  %v1956_v48 = vsel %vm1949_vm7, %v4146_v8, %v1944_v29 }
  0xfc   : > { %3327 = vmatmul.mubr.msk.bf16.vlgmr.msra.gmra.mrb[12].mxu1 %vm359_vm0, %v4079_v43 }
  0xfd   : > { %1731 = vmatpush1.bf16.msra.mxu1 %v1669_v27  ;;  %1762 = vmatprep.mubr.bf16.mxu1 %v3662_v0 }
  0xfe   : > { %1816 = vmatprep.subr.bf16.mxu1 %v1674_v24  ;;  %v2221_v23 = vpop.permute.xlu0 %2220  ;;  %v4193_v30 = vpop.permute.xlu1 %2222 }
  0xff   : > { %3341 = vmatmul.mubr.msk.bf16.vlgmr.msra.gmra.mrb[8].mxu0 %vm359_vm0, %v4179_v26  ;;  %v2236_v44 = vsel %vm2230_vm8, %v2221_v23, %v4193_v30 }
 0x100   : > { %2058 = vmatpush1.bf16.msra.mxu0 %v1954_v28  ;;  %2089 = vmatprep.mubr.bf16.mxu0 %v3662_v0 }
 0x101   : > { %3419 = vmatprep.subr.bf16.mxu0 %v3664_v38 }
 0x102   : > { %v2219_v36 = vpop.permute.xlu0 %2218 }
 0x103   : > { %v2217_v37 = vpop.permute.xlu1 %2216  ;;  %v2235_v49 = vsel %vm2230_vm8, %v2219_v36, %v2221_v23 }
 0x104   : > { %3333 = vmatmul.mubr.msk.bf16.vlgmr.msra.gmra.mrb[4].mxu1 %vm359_vm0, %v4132_v2  ;;  %v2234_v47 = vsel %vm2230_vm8, %v2217_v37, %v2219_v36  ;;  %v2233_v53 = vsel %vm2230_vm8, %v4173_v25, %v2217_v37 }
 0x105   : > { %1817 = vmatpush1.bf16.msra.mxu1 %v1673_v33  ;;  %1848 = vmatprep.mubr.bf16.mxu1 %v3662_v0 }
 0x106   : > { %2014 = vmatprep.subr.bf16.mxu1 %v1953_v32 }
 0x107   : > { %3343 = vmatmul.mubr.msk.bf16.vlgmr.msra.gmra.mrb[0].mxu0 %vm359_vm0, %v4179_v26  ;;  %v2227_v43 = vpop.permute.xlu0 %2226 }
 0x108   : > { %3420 = vmatpush3.bf16.msra.mxu0 %v1958_v34  ;;  %3421 = vmatprep.mubr.msk.bf16.mxu0 %vm3665_vm1, %v3664_v38  ;;  %v2229_v40 = vpop.permute.xlu1 %2228 }
 0x109   : > { %2252 = vmatprep.subr.bf16.mxu0 %v2232_v35  ;;  %v2239_v54 = vsel %vm2230_vm8, %v2227_v43, %v2229_v40 }
 0x10b   : > { %v2225_v31 = vpop.permute.xlu0 %2224 }
 0x10c   : > { %3335 = vmatmul.mubr.msk.bf16.vlgmr.msra.gmra.mrb[12].mxu1 %vm359_vm0, %v4132_v2  ;;  %v2494_v45 = vpop.permute.xlu1 %2493  ;;  %v2238_v52 = vsel %vm2230_vm8, %v2225_v31, %v2227_v43  ;;  %v2237_v62 = vsel %vm2230_vm8, %v4193_v30, %v2225_v31 }
 0x10d   : > { %2015 = vmatpush1.bf16.msra.mxu1 %v1952_v39  ;;  %2046 = vmatprep.mubr.bf16.mxu1 %v3662_v0 }
 0x10e   : > { %2100 = vmatprep.subr.bf16.mxu1 %v1957_v42 }
 0x10f   : > { %3422 = vmatmul.mubr.msk.bf16.vlgmr.msra.gmra.mrb[4].mxu0 %vm359_vm0, %v4179_v26 }
 0x110   : > { %2253 = vmatpush1.bf16.msra.mxu0 %v2231_v41  ;;  %2284 = vmatprep.mubr.bf16.mxu0 %v3662_v0  ;;  %v2496_v50 = vpop.permute.xlu0 %2495 }
 0x111   : > { %2338 = vmatprep.subr.bf16.mxu0 %v2236_v44  ;;  %v2492_v51 = vpop.permute.xlu1 %2491  ;;  %v2513_v55 = vsel %vm2511_vm9, %v2494_v45, %v2496_v50 }
 0x112   : > { %v2512_v63 = vsel %vm2511_vm9, %v2492_v51, %v2494_v45 }
 0x114   : > { %3342 = vmatmul.mubr.msk.bf16.vlgmr.msra.gmra.mrb[4].mxu1 %vm359_vm0, %v4179_v26  ;;  %v2498_v56 = vpop.permute.xlu0 %2497 }
 0x115   : > { %2101 = vmatpush1.bf16.msra.mxu1 %v1956_v48  ;;  %2132 = vmatprep.mubr.bf16.mxu1 %v3662_v0  ;;  %v2500_v57 = vpop.permute.xlu1 %2499  ;;  %v2514_v3 = vsel %vm2511_vm9, %v2496_v50, %v2498_v56 }
 0x116   : > { %2295 = vmatprep.subr.bf16.mxu1 %v2234_v47  ;;  %v2515_v61 = vsel %vm2511_vm9, %v2498_v56, %v2500_v57 }
 0x117   : > { %3349 = vmatmul.mubr.msk.bf16.vlgmr.msra.gmra.mrb[8].mxu0 %vm359_vm0, %v3652_v46 }
 0x118   : > { %2339 = vmatpush1.bf16.msra.mxu0 %v2235_v49  ;;  %2370 = vmatprep.mubr.bf16.mxu0 %v3662_v0  ;;  %v2502_v59 = vpop.permute.xlu0 %2501 }
 0x119   : > { %3425 = vmatprep.subr.bf16.mxu0 %v3664_v38  ;;  %v2504_v60 = vpop.permute.xlu1 %2503  ;;  %v2516_v6 = vsel %vm2511_vm9, %v2500_v57, %v2502_v59 }
 0x11a   : > { %v2517_v58 = vsel %vm2511_vm9, %v2502_v59, %v2504_v60 }
 0x11c   : > { %3344 = vmatmul.mubr.msk.bf16.vlgmr.msra.gmra.mrb[12].mxu1 %vm359_vm0, %v4179_v26  ;;  %v2506_v1 = vpop.permute.xlu0 %2505 }
 0x11d   : > { %2296 = vmatpush1.bf16.msra.mxu1 %v2233_v53  ;;  %2327 = vmatprep.mubr.bf16.mxu1 %v3662_v0  ;;  %v2508_v2 = vpop.permute.xlu1 %2507  ;;  %v2518_v7 = vsel %vm2511_vm9, %v2504_v60, %v2506_v1 }
 0x11e   : > { %2381 = vmatprep.subr.bf16.mxu1 %v2238_v52  ;;  %v2519_v5 = vsel %vm2511_vm9, %v2506_v1, %v2508_v2 }
 0x11f   : > { %3351 = vmatmul.mubr.msk.bf16.vlgmr.msra.gmra.mrb[0].mxu0 %vm359_vm0, %v3652_v46 }
 0x120   : > { %3426 = vmatpush3.bf16.msra.mxu0 %v2239_v54  ;;  %3427 = vmatprep.mubr.msk.bf16.mxu0 %vm3665_vm1, %v3664_v38  ;;  %v2510_v8 = vpop.permute.xlu0 %2509 }
 0x121   : > { %2533 = vmatprep.subr.bf16.mxu0 %v2513_v55  ;;  %v2520_v9 = vsel %vm2511_vm9, %v2508_v2, %v2510_v8 }
 0x124   : > { %3350 = vmatmul.mubr.msk.bf16.vlgmr.msra.gmra.mrb[4].mxu1 %vm359_vm0, %v3652_v46 }
 0x125   : > { %2382 = vmatpush1.bf16.msra.mxu1 %v2237_v62  ;;  %2413 = vmatprep.mubr.bf16.mxu1 %v3662_v0 }
 0x126   : > { %2576 = vmatprep.subr.bf16.mxu1 %v2515_v61 }
 0x127   : > { %3428 = vmatmul.mubr.msk.bf16.vlgmr.msra.gmra.mrb[4].mxu0 %vm359_vm0, %v3652_v46 }
 0x128   : > { %2534 = vmatpush1.bf16.msra.mxu0 %v2512_v63  ;;  %2565 = vmatprep.mubr.bf16.mxu0 %v3662_v0 }
 0x129   : > { %2619 = vmatprep.subr.bf16.mxu0 %v2517_v58 }
 0x12c   : > { %3352 = vmatmul.mubr.msk.bf16.vlgmr.msra.gmra.mrb[12].mxu1 %vm359_vm0, %v3652_v46 }
 0x12d   : > { %2577 = vmatpush1.bf16.msra.mxu1 %v2514_v3  ;;  %2608 = vmatprep.mubr.bf16.mxu1 %v3662_v0 }
 0x12e   : > { %2662 = vmatprep.subr.bf16.mxu1 %v2519_v5 }
 0x12f   : > { %3357 = vmatmul.mubr.msk.bf16.vlgmr.msra.gmra.mrb[8].mxu0 %vm359_vm0, %v3653_v4 }
 0x130   : > { %2620 = vmatpush1.bf16.msra.mxu0 %v2516_v6  ;;  %2651 = vmatprep.mubr.bf16.mxu0 %v3662_v0 }
 0x131   : > { %3431 = vmatprep.subr.bf16.mxu0 %v3664_v38 }
 0x134   : > { %3358 = vmatmul.mubr.msk.bf16.vlgmr.msra.gmra.mrb[4].mxu1 %vm359_vm0, %v3653_v4 }
 0x135   : > { %2663 = vmatpush1.bf16.msra.mxu1 %v2518_v7  ;;  %2694 = vmatprep.mubr.bf16.mxu1 %v3662_v0 }
 0x137   : > { %3359 = vmatmul.mubr.msk.bf16.vlgmr.msra.gmra.mrb[0].mxu0 %vm359_vm0, %v3653_v4 }
 0x138   : > { %3432 = vmatpush3.bf16.msra.mxu0 %v2520_v9  ;;  %3433 = vmatprep.mubr.msk.bf16.mxu0 %vm3665_vm1, %v3664_v38  ;;  %v4277_v38 = vpop.permute.xlu1 %2768 }
 0x13c   : > { %3360 = vmatmul.mubr.msk.bf16.vlgmr.msra.gmra.mrb[12].mxu1 %vm359_vm0, %v3653_v4  ;;  %v4282_v30 = vpop.permute.xlu1 %2798 }
 0x13d   : > { %v4284_v33 = vpop.permute.xlu0 %2773 }
 0x13f   : > { %3434 = vmatmul.mubr.msk.bf16.vlgmr.msra.gmra.mrb[4].mxu0 %vm359_vm0, %v3653_v4 }
 0x140   : > { %v4302_v47 = vpop.permute.xlu1 %2803 }
 0x176   : > { %v483_v10 = vpop.f32.mrb[8].mxu1 }
 0x177   : > { %v485_v11 = vpop.f32.mrb[9].mxu1 }
 0x178   : > { %v487_v12 = vpop.f32.mrb[10].mxu1 }
 0x179   : > { %v489_v13 = vpop.f32.mrb[11].mxu1 }
 0x187   : > { %v4273_v14 = vpop.f32.mrb[16].mxu1 }
 0x188   : > { %v3387_v15 = vpop.f32.mrb[17].mxu1 }
 0x189   : > { %v4275_v16 = vpop.f32.mrb[18].mxu1 }
 0x18a   : > { %v3388_v0 = vpop.f32.mrb[19].mxu1 }
 0x18f   : > { %v627_v19 = vpop.f32.mrb[0].mxu1 }
 0x190   : > { %v629_v17 = vpop.f32.mrb[1].mxu1 }
 0x191   : > { %v631_v20 = vpop.f32.mrb[2].mxu1 }
 0x192   : > { %v633_v21 = vpop.f32.mrb[3].mxu1 }
 0x202   : > { %v2567_v22 = vpop.f32.mrb[8].mxu0 }
 0x203   : > { %v3437_v25 = vadd.f32 %v2567_v22, %v627_v19  ;;  %v2569_v26 = vpop.f32.mrb[9].mxu0 }
 0x204   : > { %v3438_v27 = vadd.f32 %v2569_v26, %v629_v17  ;;  %v2571_v18 = vpop.f32.mrb[10].mxu0 }
 0x205   : > { %v2776_v24 = vmul.f32 %v3437_v25, %v4277_v38  ;;  %v3439_v28 = vadd.f32 %v2571_v18, %v631_v20  ;;  %v2573_v29 = vpop.f32.mrb[11].mxu0 }
 0x206   : > { %v2777_v23 = vmul.f32 %v3438_v27, %v4277_v38  ;;  %v3440_v32 = vadd.f32 %v2573_v29, %v633_v21 }
 0x207   : > { %v4286_v34 = vpop.f32.mrb[4].mxu1  ;;  %v2806_v35 = vadd.f32 %v4282_v30, %v2776_v24  ;;  %v2785_v41 = vmul.f32 %v3439_v28, %v4284_v33 }
 0x208   : > { %v4289_v36 = vpop.f32.mrb[5].mxu1  ;;  %v2807_v37 = vadd.f32 %v4282_v30, %v2777_v23  ;;  %v2786_v58 = vmul.f32 %v3440_v32, %v4284_v33  ;;  %v2778_v26 = vmul.f32 %v4277_v38, %v4286_v34 }
 0x209   : > { %v4297_v39 = vpop.f32.mrb[6].mxu1  ;;  %vm2824_vm10 = vcmp.ge.f32.partialorder %v2806_v35, 0.0  ;;  %v2842_v40 = vmul.f32 0.1, %v2806_v35  ;;  %v2815_v51 = vadd.f32 %v4302_v47, %v2785_v41  ;;  %v2779_v18 = vmul.f32 %v4277_v38, %v4289_v36 }
 0x20a   : > { %v4300_v42 = vpop.f32.mrb[7].mxu1  ;;  %v2653_v43 = vpop.f32.mrb[0].mxu0  ;;  %v2843_v49 = vmul.f32 0.1, %v2807_v37  ;;  %vm2825_vm12 = vcmp.ge.f32.partialorder %v2807_v37, 0.0  ;;  %v2816_v5 = vadd.f32 %v4302_v47, %v2786_v58  ;;  %v2808_v27 = vadd.f32 %v4282_v30, %v2778_v26 }
 0x20b   : > { %v3441_v44 = vadd.f32 %v2653_v43, %v483_v10  ;;  %v2655_v45 = vpop.f32.mrb[1].mxu0  ;;  %v2860_v46 = vsel %vm2824_vm10, %v2806_v35, %v2842_v40  ;;  %vm2833_vm13 = vcmp.ge.f32.partialorder %v2815_v51, 0.0  ;;  %v2851_v59 = vmul.f32 0.1, %v2815_v51 }
 0x20c   : > { %v3442_v48 = vadd.f32 %v2655_v45, %v485_v11  ;;  %v2657_v31 = vpop.f32.mrb[2].mxu0  ;;  %2883 = vrot.lane.b32.xlu0 %v2860_v46, %s3666_s30  ;;  %2879 = vst.msk [vmem:[%s4295_s21] sm:$0xff] %vm2878_vm11, %v2860_v46  ;;  %v2861_v55 = vsel %vm2825_vm12, %v2807_v37, %v2843_v49  ;;  %vm2834_vm14 = vcmp.ge.f32.partialorder %v2816_v5, 0.0  ;;  %v2852_v6 = vmul.f32 0.1, %v2816_v5 }
 0x20d   : > { %v2659_v50 = vpop.f32.mrb[3].mxu0  ;;  %v3443_v52 = vadd.f32 %v2657_v31, %v487_v12  ;;  %2905 = vrot.lane.b32.xlu1 %v2861_v55, %s3674_s22  ;;  %v2869_v62 = vsel %vm2833_vm13, %v2815_v51, %v2851_v59  ;;  %v2780_v8 = vmul.f32 %v3441_v44, %v4277_v38  ;;  %v2844_v24 = vmul.f32 0.1, %v2808_v27 }
 0x20e   : > { %v3444_v53 = vadd.f32 %v2659_v50, %v489_v13  ;;  %2880 = vst.msk [vmem:[%s4295_s21 + $0x40] sm:$0xff] %vm2878_vm11, %v2869_v62  ;;  %v2870_v7 = vsel %vm2834_vm14, %v2816_v5, %v2852_v6  ;;  %v2781_v10 = vmul.f32 %v3442_v48, %v4277_v38  ;;  %v2809_v28 = vadd.f32 %v4282_v30, %v2779_v18 }
 0x20f   : > { %v4308_v54 = vpop.f32.mrb[12].mxu1  ;;  %v2810_v9 = vadd.f32 %v4282_v30, %v2780_v8  ;;  %v2789_v12 = vmul.f32 %v3443_v52, %v4284_v33  ;;  %v2787_v29 = vmul.f32 %v4284_v33, %v4297_v39  ;;  %vm2826_vm3 = vcmp.ge.f32.partialorder %v2808_v27, 0.0 }
 0x210   : > { %v4310_v56 = vpop.f32.mrb[13].mxu1  ;;  %2892 = vrot.lane.b32.xlu0 %v2860_v46, %s3673_s19  ;;  %v2811_v11 = vadd.f32 %v4282_v30, %v2781_v10  ;;  %v2790_v17 = vmul.f32 %v3444_v53, %v4284_v33  ;;  %v2845_v23 = vmul.f32 0.1, %v2809_v28  ;;  %v2862_v34 = vsel %vm2826_vm3, %v2808_v27, %v2844_v24 }
 0x211   : > { %v4313_v57 = vpop.f32.mrb[14].mxu1  ;;  %2885 = vrot.lane.b32.xlu1 %v2869_v62, %s3666_s30  ;;  %s3678_s30 = smov 114   ;;  %v2846_v13 = vmul.f32 0.1, %v2810_v9  ;;  %vm2828_vm15 = vcmp.ge.f32.partialorder %v2810_v9, 0.0  ;;  %v2819_v15 = vadd.f32 %v4302_v47, %v2789_v12  ;;  %v2817_v32 = vadd.f32 %v4302_v47, %v2787_v29 }
 0x212   : > { %v4315_v60 = vpop.f32.mrb[15].mxu1  ;;  %v2739_v61 = vpop.f32.mrb[4].mxu0  ;;  %vm2829_vm0 = vcmp.ge.f32.partialorder %v2811_v11, 0.0  ;;  %v2820_v21 = vadd.f32 %v4302_v47, %v2790_v17  ;;  %vm2827_vm4 = vcmp.ge.f32.partialorder %v2809_v28, 0.0  ;;  %v2788_v40 = vmul.f32 %v4284_v33, %v4300_v42 }
 0x213   : > { %v3435_v63 = vpop.f32.mrb[5].mxu0  ;;  %v4319_v1 = vadd.f32 %v2739_v61, %v4273_v14  ;;  %v2847_v14 = vmul.f32 0.1, %v2811_v11  ;;  %v2855_v19 = vmul.f32 0.1, %v2819_v15  ;;  %vm2837_vm1 = vcmp.ge.f32.partialorder %v2819_v15, 0.0 }
 0x214   : > { %v2742_v2 = vpop.f32.mrb[6].mxu0  ;;  %2903 = vrot.lane.b32.xlu0 %v2860_v46, %s3674_s22  ;;  %v2856_v22 = vmul.f32 0.1, %v2820_v21  ;;  %vm2838_vm2 = vcmp.ge.f32.partialorder %v2820_v21, 0.0  ;;  %v2853_v35 = vmul.f32 0.1, %v2817_v32  ;;  %v2863_v36 = vsel %vm2827_vm4, %v2809_v28, %v2845_v23 }
 0x215   : > { %v3436_v3 = vpop.f32.mrb[7].mxu0  ;;  %v4326_v4 = vadd.f32 %v2742_v2, %v4275_v16  ;;  %2894 = vrot.lane.b32.xlu1 %v2869_v62, %s3673_s19  ;;  %v2864_v16 = vsel %vm2828_vm15, %v2810_v9, %v2846_v13  ;;  %v2865_v0 = vsel %vm2829_vm0, %v2811_v11, %v2847_v14  ;;  %v2873_v20 = vsel %vm2837_vm1, %v2819_v15, %v2855_v19  ;;  %s3696_s19 = smov 82  }
 0x216   : > { %v2874_v25 = vsel %vm2838_vm2, %v2820_v21, %v2856_v22  ;;  %vm2835_vm5 = vcmp.ge.f32.partialorder %v2817_v32, 0.0  ;;  %v2784_v39 = vmul.f32 %v4319_v1, %v4277_v38  ;;  %v2818_v43 = vadd.f32 %v4302_v47, %v2788_v40 }
 0x217   : > { %v2871_v37 = vsel %vm2835_vm5, %v2817_v32, %v2853_v35  ;;  %v2782_v48 = vmul.f32 %v4277_v38, %v4308_v54  ;;  %v2793_v31 = vmul.f32 %v4326_v4, %v4284_v33  ;;  %v2783_v52 = vmul.f32 %v4277_v38, %v4310_v56 }
 0x218   : > { %2919 = vrot.lane.b32.xlu0 %v2861_v55, %s3675_s23  ;;  %v2814_v41 = vadd.f32 %v4282_v30, %v2784_v39  ;;  %v2854_v45 = vmul.f32 0.1, %v2818_v43  ;;  %vm2836_vm8 = vcmp.ge.f32.partialorder %v2818_v43, 0.0  ;;  %v2791_v59 = vmul.f32 %v4284_v33, %v4313_v57 }
 0x219   : > { %2909 = vrot.lane.b32.xlu1 %v2870_v7, %s3674_s22  ;;  %v2812_v49 = vadd.f32 %v4282_v30, %v2782_v48  ;;  %v2823_v50 = vadd.f32 %v4302_v47, %v2793_v31  ;;  %vm2889_vm12 = vcmask 523520   ;;  %vm2898_vm13 = vcmask 785920  }
 0x21a   : > { %v2850_v44 = vmul.f32 0.1, %v2814_v41  ;;  %vm2832_vm7 = vcmp.ge.f32.partialorder %v2814_v41, 0.0  ;;  %v2872_v42 = vsel %vm2836_vm8, %v2818_v43, %v2854_v45  ;;  %vm2911_vm15 = vcmask 998400  }
 0x21b   : > { %v2848_v51 = vmul.f32 0.1, %v2812_v49  ;;  %vm2830_vm9 = vcmp.ge.f32.partialorder %v2812_v49, 0.0  ;;  %v2859_v53 = vmul.f32 0.1, %v2823_v50  ;;  %vm2841_vm10 = vcmp.ge.f32.partialorder %v2823_v50, 0.0 }
 0x21c   : > { %2927 = vrot.lane.b32.xlu0 %v2861_v55, %s3676_s24  ;;  %v4370_v46 = vsel %vm2832_vm7, %v2814_v41, %v2850_v44  ;;  %vm2916_vm1 = vcmask 1048320   ;;  %vm2953_vm3 = vcmask 932864   ;;  %vm3035_vm4 = vcmask 801792  }
 0x21d   : > { %2921 = vrot.lane.b32.xlu1 %v2870_v7, %s3675_s23  ;;  %v2866_v54 = vsel %vm2830_vm9, %v2812_v49, %v2848_v51  ;;  %v4389_v61 = vsel %vm2841_vm10, %v2823_v50, %v2859_v53  ;;  %s3698_s23 = smov 70   ;;  %vm3109_vm5 = vcmask 687104   ;;  %vm3150_vm7 = vcmask 621568  }
 0x21e   : > { %vm3191_vm8 = vcmask 556032  }
 0x220   : > { %2935 = vrot.lane.b32.xlu0 %v2861_v55, %s3677_s25 }
 0x221   : > { %2929 = vrot.lane.b32.xlu1 %v2870_v7, %s3676_s24  ;;  %s3699_s24 = smov 74  }
 0x224   : > { %2945 = vrot.lane.b32.xlu0 %v2861_v55, %s3678_s30  ;;  %v2813_v55 = vadd.f32 %v4282_v30, %v2783_v52 }
 0x225   : > { %2937 = vrot.lane.b32.xlu1 %v2870_v7, %s3677_s25  ;;  %s3700_s25 = smov 66  }
 0x226   : > { %v2849_v56 = vmul.f32 0.1, %v2813_v55  ;;  %vm2831_vm14 = vcmp.ge.f32.partialorder %v2813_v55, 0.0 }
 0x228   : > { %2907 = vrot.lane.b32.xlu0 %v2869_v62, %s3674_s22  ;;  %v2821_v62 = vadd.f32 %v4302_v47, %v2791_v59  ;;  %v2867_v58 = vsel %vm2831_vm14, %v2813_v55, %v2849_v56  ;;  %s3697_s22 = smov 72  }
 0x229   : > { %3029 = vrot.lane.b32.xlu1 %v2864_v16, %s3679_s26 }
 0x22a   : > { %v2857_v63 = vmul.f32 0.1, %v2821_v62  ;;  %vm2839_vm0 = vcmp.ge.f32.partialorder %v2821_v62, 0.0 }
 0x22c   : > { %2949 = vrot.lane.b32.xlu0 %v2870_v7, %s3678_s30  ;;  %v2875_v4 = vsel %vm2839_vm0, %v2821_v62, %v2857_v63  ;;  %v2792_v7 = vmul.f32 %v4284_v33, %v4315_v60 }
 0x22d   : > { %3062 = vrot.lane.b32.xlu1 %v2865_v0, %s3669_s8 }
 0x22e   : > { %v2822_v10 = vadd.f32 %v4302_v47, %v2792_v7 }
 0x230   : > { %3042 = vrot.lane.b32.xlu0 %v2864_v16, %s3680_s27  ;;  %v2858_v60 = vmul.f32 0.1, %v2822_v10  ;;  %vm2840_vm2 = vcmp.ge.f32.partialorder %v2822_v10, 0.0 }
 0x231   : > { %3033 = vrot.lane.b32.xlu1 %v2873_v20, %s3679_s26 }
 0x232   : > { %v2876_v47 = vsel %vm2840_vm2, %v2822_v10, %v2858_v60 }
 0x234   : > { %3050 = vrot.lane.b32.xlu0 %v2864_v16, %s3667_s6 }
 0x235   : > { %3044 = vrot.lane.b32.xlu1 %v2873_v20, %s3680_s27 }
 0x238   : > { %3060 = vrot.lane.b32.xlu0 %v2864_v16, %s3669_s8 }
 0x239   : > { %3052 = vrot.lane.b32.xlu1 %v2873_v20, %s3667_s6  ;;  %s3685_s6 = smov 112  }
 0x23c   : > { %3075 = vrot.lane.b32.xlu0 %v2865_v0, %s3681_s28 }
 0x23d   : > { %3066 = vrot.lane.b32.xlu1 %v2874_v25, %s3669_s8 }
 0x240   : > { %3083 = vrot.lane.b32.xlu0 %v2865_v0, %s3682_s29 }
 0x241   : > { %3077 = vrot.lane.b32.xlu1 %v2874_v25, %s3681_s28 }
 0x244   : > { %3091 = vrot.lane.b32.xlu0 %v2865_v0, %s3683_s7 }
 0x245   : > { %3085 = vrot.lane.b32.xlu1 %v2874_v25, %s3682_s29 }
 0x248   : > { %3101 = vrot.lane.b32.xlu0 %v2865_v0, %s3684_s9 }
 0x249   : > { %3093 = vrot.lane.b32.xlu1 %v2874_v25, %s3683_s7 }
 0x24c   : > { %3064 = vrot.lane.b32.xlu0 %v2873_v20, %s3669_s8  ;;  %s3687_s8 = smov 110  }
 0x24d   : > { %2947 = vrot.lane.b32.xlu1 %v2862_v34, %s3678_s30 }
 0x250   : > { %3105 = vrot.lane.b32.xlu0 %v2874_v25, %s3684_s9 }
 0x251   : > { %2988 = vrot.lane.b32.xlu1 %v2863_v36, %s3686_s10 }
 0x254   : > { %2960 = vrot.lane.b32.xlu0 %v2862_v34, %s3685_s6 }
 0x255   : > { %2951 = vrot.lane.b32.xlu1 %v2871_v37, %s3678_s30 }
 0x258   : > { %2968 = vrot.lane.b32.xlu0 %v2862_v34, %s3687_s8 }
 0x259   : > { %2962 = vrot.lane.b32.xlu1 %v2871_v37, %s3685_s6 }
 0x25c   : > { %2976 = vrot.lane.b32.xlu0 %v2862_v34, %s3688_s11 }
 0x25d   : > { %2970 = vrot.lane.b32.xlu1 %v2871_v37, %s3687_s8 }
 0x260   : > { %2986 = vrot.lane.b32.xlu0 %v2862_v34, %s3686_s10 }
 0x261   : > { %2978 = vrot.lane.b32.xlu1 %v2871_v37, %s3688_s11 }
 0x264   : > { %3001 = vrot.lane.b32.xlu0 %v2863_v36, %s3689_s12 }
 0x265   : > { %3185 = vrot.lane.b32.xlu1 %v4370_v46, %s3691_s14 }
 0x268   : > { %3009 = vrot.lane.b32.xlu0 %v2863_v36, %s3690_s13 }
 0x269   : > { %2992 = vrot.lane.b32.xlu1 %v2872_v42, %s3686_s10 }
 0x26c   : > { %3017 = vrot.lane.b32.xlu0 %v2863_v36, %s3692_s15 }
 0x26d   : > { %3003 = vrot.lane.b32.xlu1 %v2872_v42, %s3689_s12 }
 0x270   : > { %3027 = vrot.lane.b32.xlu0 %v2863_v36, %s3679_s26 }
 0x271   : > { %3011 = vrot.lane.b32.xlu1 %v2872_v42, %s3690_s13 }
 0x274   : > { %2990 = vrot.lane.b32.xlu0 %v2871_v37, %s3686_s10 }
 0x275   : > { %3019 = vrot.lane.b32.xlu1 %v2872_v42, %s3692_s15 }
 0x278   : > { %3031 = vrot.lane.b32.xlu0 %v2872_v42, %s3679_s26 }
 0x279   : > { %3189 = vrot.lane.b32.xlu1 %v4389_v61, %s3691_s14 }
 0x27c   : > { %3124 = vrot.lane.b32.xlu0 %v2866_v54, %s3693_s16 }
 0x27d   : > { %3103 = vrot.lane.b32.xlu1 %v2866_v54, %s3684_s9 }
 0x27e   : > { %v2884_v38 = vpop.permute.xlu0 %2883 }
 0x27f   : > { %2890 = vst.msk [vmem:[%s4295_s21] sm:$0xff] %vm2889_vm12, %v2884_v38  ;;  %v2906_v57 = vpop.permute.xlu1 %2905 }
 0x280   : > { %3132 = vrot.lane.b32.xlu0 %v2866_v54, %s3694_s17 }
 0x281   : > { %3144 = vrot.lane.b32.xlu1 %v2867_v58, %s3695_s20 }
 0x282   : > { %v2893_v30 = vpop.permute.xlu0 %2892 }
 0x283   : > { %2899 = vst.msk [vmem:[%s4295_s21] sm:$0xff] %vm2898_vm13, %v2893_v30  ;;  %v2886_v2 = vpop.permute.xlu1 %2885 }
 0x284   : > { %3142 = vrot.lane.b32.xlu0 %v2866_v54, %s3695_s20  ;;  %2891 = vst.msk [vmem:[%s4295_s21 + $0x40] sm:$0xff] %vm2889_vm12, %v2886_v2 }
 0x285   : > { %3126 = vrot.lane.b32.xlu1 %v2875_v4, %s3693_s16 }
 0x286   : > { %v2904_v1 = vpop.permute.xlu0 %2903 }
 0x287   : > { %v2912_v3 = vsel %vm2911_vm15, %v2904_v1, %v2906_v57  ;;  %v2895_v6 = vpop.permute.xlu1 %2894 }
 0x288   : > { %2917 = vst.msk [vmem:[%s4295_s21] sm:$0xff] %vm2916_vm1, %v2912_v3  ;;  %3116 = vrot.lane.b32.xlu0 %v2866_v54, %s3696_s19 }
 0x289   : > { %2900 = vst.msk [vmem:[%s4295_s21 + $0x40] sm:$0xff] %vm2898_vm13, %v2895_v6  ;;  %3107 = vrot.lane.b32.xlu1 %v2875_v4, %s3684_s9 }
 0x28a   : > { %v2920_v5 = vpop.permute.xlu0 %2919 }
 0x28b   : > { %2925 = vst.msk [vmem:[%s4295_s21 + $0x8] sm:$0xff] %vm2878_vm11, %v2920_v5  ;;  %v2910_v9 = vpop.permute.xlu1 %2909 }
 0x28c   : > { %3165 = vrot.lane.b32.xlu0 %v2867_v58, %s3697_s22 }
 0x28d   : > { %3134 = vrot.lane.b32.xlu1 %v2875_v4, %s3694_s17 }
 0x28e   : > { %v2928_v8 = vpop.permute.xlu0 %2927 }
 0x28f   : > { %2933 = vst.msk [vmem:[%s4295_s21 + $0x8] sm:$0xff] %vm2889_vm12, %v2928_v8  ;;  %v2922_v33 = vpop.permute.xlu1 %2921 }
 0x290   : > { %3173 = vrot.lane.b32.xlu0 %v2867_v58, %s3698_s23  ;;  %2926 = vst.msk [vmem:[%s4295_s21 + $0x48] sm:$0xff] %vm2878_vm11, %v2922_v33 }
 0x291   : > { %3118 = vrot.lane.b32.xlu1 %v2875_v4, %s3696_s19 }
 0x292   : > { %v2936_v11 = vpop.permute.xlu0 %2935 }
 0x293   : > { %2941 = vst.msk [vmem:[%s4295_s21 + $0x8] sm:$0xff] %vm2898_vm13, %v2936_v11  ;;  %v2930_v13 = vpop.permute.xlu1 %2929 }
 0x294   : > { %3183 = vrot.lane.b32.xlu0 %v2867_v58, %s3691_s14  ;;  %2934 = vst.msk [vmem:[%s4295_s21 + $0x48] sm:$0xff] %vm2889_vm12, %v2930_v13 }
 0x295   : > { %3167 = vrot.lane.b32.xlu1 %v2876_v47, %s3697_s22 }
 0x296   : > { %v2946_v12 = vpop.permute.xlu0 %2945 }
 0x297   : > { %v2938_v15 = vpop.permute.xlu1 %2937 }
 0x298   : > { %3157 = vrot.lane.b32.xlu0 %v2867_v58, %s3699_s24  ;;  %2942 = vst.msk [vmem:[%s4295_s21 + $0x48] sm:$0xff] %vm2898_vm13, %v2938_v15 }
 0x299   : > { %3148 = vrot.lane.b32.xlu1 %v2876_v47, %s3695_s20 }
 0x29a   : > { %v2908_v14 = vpop.permute.xlu0 %2907 }
 0x29b   : > { %v2913_v16 = vsel %vm2911_vm15, %v2908_v14, %v2910_v9  ;;  %v4434_v19 = vpop.permute.xlu1 %3029 }
 0x29c   : > { %2918 = vst.msk [vmem:[%s4295_s21 + $0x40] sm:$0xff] %vm2916_vm1, %v2913_v16  ;;  %3146 = vrot.lane.b32.xlu0 %v2875_v4, %s3695_s20 }
 0x29d   : > { %3175 = vrot.lane.b32.xlu1 %v2876_v47, %s3698_s23 }
 0x29e   : > { %v2950_v0 = vpop.permute.xlu0 %2949 }
 0x29f   : > { %v3063_v20 = vpop.permute.xlu1 %3062 }
 0x2a0   : > { %3187 = vrot.lane.b32.xlu0 %v2876_v47, %s3691_s14 }
 0x2a1   : > { %3159 = vrot.lane.b32.xlu1 %v2876_v47, %s3699_s24 }
 0x2a2   : > { %v3043_v17 = vpop.permute.xlu0 %3042 }
 0x2a3   : > { %3048 = vst.msk [vmem:[%s4295_s21 + $0x20] sm:$0xff] %vm2878_vm11, %v3043_v17  ;;  %v4440_v22 = vpop.permute.xlu1 %3033 }
 0x2a4   : > { %3198 = vrot.lane.b32.xlu0 %v4370_v46, %s3700_s25 }
 0x2a5   : > { %3200 = vrot.lane.b32.xlu1 %v4389_v61, %s3700_s25 }
 0x2a6   : > { %v3051_v21 = vpop.permute.xlu0 %3050 }
 0x2a7   : > { %3056 = vst.msk [vmem:[%s4295_s21 + $0x20] sm:$0xff] %vm2889_vm12, %v3051_v21  ;;  %v3045_v26 = vpop.permute.xlu1 %3044 }
 0x2a8   : > { %3049 = vst.msk [vmem:[%s4295_s21 + $0x60] sm:$0xff] %vm2878_vm11, %v3045_v26 }
 0x2aa   : > { %v3061_v25 = vpop.permute.xlu0 %3060 }
 0x2ab   : > { %v3069_v27 = vsel %vm1666_vm6, %v3061_v25, %v3063_v20  ;;  %v3053_v24 = vpop.permute.xlu1 %3052 }
 0x2ac   : > { %3073 = vst.msk [vmem:[%s4295_s21 + $0x20] sm:$0xff] %vm2898_vm13, %v3069_v27 }
 0x2ad   : > { %3057 = vst.msk [vmem:[%s4295_s21 + $0x60] sm:$0xff] %vm2889_vm12, %v3053_v24 }
 0x2ae   : > { %v3076_v18 = vpop.permute.xlu0 %3075 }
 0x2af   : > { %3081 = vst.msk [vmem:[%s4295_s21 + $0x20] sm:$0xff] %vm2916_vm1, %v3076_v18  ;;  %v3067_v29 = vpop.permute.xlu1 %3066 }
 0x2b2   : > { %v3084_v28 = vpop.permute.xlu0 %3083 }
 0x2b3   : > { %3089 = vst.msk [vmem:[%s4295_s21 + $0x28] sm:$0xff] %vm2878_vm11, %v3084_v28  ;;  %v3078_v32 = vpop.permute.xlu1 %3077 }
 0x2b6   : > { %v3092_v23 = vpop.permute.xlu0 %3091 }
 0x2b7   : > { %3097 = vst.msk [vmem:[%s4295_s21 + $0x28] sm:$0xff] %vm2889_vm12, %v3092_v23  ;;  %v3086_v35 = vpop.permute.xlu1 %3085 }
 0x2b8   : > { %3090 = vst.msk [vmem:[%s4295_s21 + $0x68] sm:$0xff] %vm2878_vm11, %v3086_v35 }
 0x2ba   : > { %v4458_v34 = vpop.permute.xlu0 %3101 }
 0x2bb   : > { %v3094_v37 = vpop.permute.xlu1 %3093 }
 0x2bc   : > { %3098 = vst.msk [vmem:[%s4295_s21 + $0x68] sm:$0xff] %vm2889_vm12, %v3094_v37 }
 0x2be   : > { %v3065_v36 = vpop.permute.xlu0 %3064 }
 0x2bf   : > { %v3070_v39 = vsel %vm1666_vm6, %v3065_v36, %v3067_v29  ;;  %v2948_v41 = vpop.permute.xlu1 %2947  ;;  %vm2994_vm6 = vcmask 867328  }
 0x2c0   : > { %3074 = vst.msk [vmem:[%s4295_s21 + $0x60] sm:$0xff] %vm2898_vm13, %v3070_v39  ;;  %v2954_v43 = vsel %vm2953_vm3, %v2946_v12, %v2948_v41 }
 0x2c1   : > { %3082 = vst.msk [vmem:[%s4295_s21 + $0x60] sm:$0xff] %vm2916_vm1, %v3078_v32  ;;  %2958 = vst.msk [vmem:[%s4295_s21 + $0x8] sm:$0xff] %vm2916_vm1, %v2954_v43 }
 0x2c2   : > { %v4469_v40 = vpop.permute.xlu0 %3105 }
 0x2c3   : > { %v2989_v45 = vpop.permute.xlu1 %2988 }
 0x2c6   : > { %v2961_v44 = vpop.permute.xlu0 %2960 }
 0x2c7   : > { %2966 = vst.msk [vmem:[%s4295_s21 + $0x10] sm:$0xff] %vm2878_vm11, %v2961_v44  ;;  %v2952_v42 = vpop.permute.xlu1 %2951 }
 0x2c8   : > { %v2955_v48 = vsel %vm2953_vm3, %v2950_v0, %v2952_v42 }
 0x2c9   : > { %2959 = vst.msk [vmem:[%s4295_s21 + $0x48] sm:$0xff] %vm2916_vm1, %v2955_v48 }
 0x2ca   : > { %v2969_v46 = vpop.permute.xlu0 %2968 }
 0x2cb   : > { %2974 = vst.msk [vmem:[%s4295_s21 + $0x10] sm:$0xff] %vm2889_vm12, %v2969_v46  ;;  %v2963_v49 = vpop.permute.xlu1 %2962 }
 0x2cc   : > { %2967 = vst.msk [vmem:[%s4295_s21 + $0x50] sm:$0xff] %vm2878_vm11, %v2963_v49 }
 0x2ce   : > { %v2977_v31 = vpop.permute.xlu0 %2976 }
 0x2cf   : > { %2982 = vst.msk [vmem:[%s4295_s21 + $0x10] sm:$0xff] %vm2898_vm13, %v2977_v31  ;;  %v2971_v51 = vpop.permute.xlu1 %2970 }
 0x2d0   : > { %2975 = vst.msk [vmem:[%s4295_s21 + $0x50] sm:$0xff] %vm2889_vm12, %v2971_v51 }
 0x2d2   : > { %v2987_v50 = vpop.permute.xlu0 %2986 }
 0x2d3   : > { %v2995_v52 = vsel %vm2994_vm6, %v2987_v50, %v2989_v45  ;;  %v2979_v54 = vpop.permute.xlu1 %2978 }
 0x2d4   : > { %2999 = vst.msk [vmem:[%s4295_s21 + $0x10] sm:$0xff] %vm2916_vm1, %v2995_v52 }
 0x2d5   : > { %2983 = vst.msk [vmem:[%s4295_s21 + $0x50] sm:$0xff] %vm2898_vm13, %v2979_v54 }
 0x2d6   : > { %v3002_v53 = vpop.permute.xlu0 %3001 }
 0x2d7   : > { %3007 = vst.msk [vmem:[%s4295_s21 + $0x18] sm:$0xff] %vm2878_vm11, %v3002_v53  ;;  %v3186_v59 = vpop.permute.xlu1 %3185 }
 0x2da   : > { %v3010_v55 = vpop.permute.xlu0 %3009 }
 0x2db   : > { %3015 = vst.msk [vmem:[%s4295_s21 + $0x18] sm:$0xff] %vm2889_vm12, %v3010_v55  ;;  %v2993_v38 = vpop.permute.xlu1 %2992 }
 0x2de   : > { %v3018_v61 = vpop.permute.xlu0 %3017 }
 0x2df   : > { %3023 = vst.msk [vmem:[%s4295_s21 + $0x18] sm:$0xff] %vm2898_vm13, %v3018_v61  ;;  %v3004_v62 = vpop.permute.xlu1 %3003 }
 0x2e0   : > { %3008 = vst.msk [vmem:[%s4295_s21 + $0x58] sm:$0xff] %vm2878_vm11, %v3004_v62 }
 0x2e2   : > { %v3028_v56 = vpop.permute.xlu0 %3027 }
 0x2e3   : > { %v3036_v30 = vsel %vm3035_vm4, %v3028_v56, %v4434_v19  ;;  %v3012_v63 = vpop.permute.xlu1 %3011 }
 0x2e4   : > { %3040 = vst.msk [vmem:[%s4295_s21 + $0x18] sm:$0xff] %vm2916_vm1, %v3036_v30 }
 0x2e5   : > { %3016 = vst.msk [vmem:[%s4295_s21 + $0x58] sm:$0xff] %vm2889_vm12, %v3012_v63 }
 0x2e6   : > { %v2991_v57 = vpop.permute.xlu0 %2990 }
 0x2e7   : > { %v2996_v58 = vsel %vm2994_vm6, %v2991_v57, %v2993_v38  ;;  %v3020_v2 = vpop.permute.xlu1 %3019 }
 0x2e8   : > { %3000 = vst.msk [vmem:[%s4295_s21 + $0x50] sm:$0xff] %vm2916_vm1, %v2996_v58 }
 0x2e9   : > { %3024 = vst.msk [vmem:[%s4295_s21 + $0x58] sm:$0xff] %vm2898_vm13, %v3020_v2 }
 0x2ea   : > { %v3032_v1 = vpop.permute.xlu0 %3031 }
 0x2eb   : > { %v3037_v3 = vsel %vm3035_vm4, %v3032_v1, %v4440_v22  ;;  %v3190_v5 = vpop.permute.xlu1 %3189 }
 0x2ec   : > { %3041 = vst.msk [vmem:[%s4295_s21 + $0x58] sm:$0xff] %vm2916_vm1, %v3037_v3 }
 0x2ee   : > { %v3125_v4 = vpop.permute.xlu0 %3124 }
 0x2ef   : > { %3130 = vst.msk [vmem:[%s4295_s21 + $0x30] sm:$0xff] %vm2878_vm11, %v3125_v4  ;;  %v3104_v7 = vpop.permute.xlu1 %3103 }
 0x2f0   : > { %v3110_v8 = vsel %vm3109_vm5, %v4458_v34, %v3104_v7 }
 0x2f1   : > { %3114 = vst.msk [vmem:[%s4295_s21 + $0x28] sm:$0xff] %vm2898_vm13, %v3110_v8 }
 0x2f2   : > { %v3133_v6 = vpop.permute.xlu0 %3132 }
 0x2f3   : > { %3138 = vst.msk [vmem:[%s4295_s21 + $0x30] sm:$0xff] %vm2889_vm12, %v3133_v6  ;;  %v3145_v10 = vpop.permute.xlu1 %3144 }
 0x2f6   : > { %v3143_v9 = vpop.permute.xlu0 %3142 }
 0x2f7   : > { %v3151_v11 = vsel %vm3150_vm7, %v3143_v9, %v3145_v10  ;;  %v3127_v60 = vpop.permute.xlu1 %3126 }
 0x2f8   : > { %3155 = vst.msk [vmem:[%s4295_s21 + $0x30] sm:$0xff] %vm2898_vm13, %v3151_v11 }
 0x2f9   : > { %3131 = vst.msk [vmem:[%s4295_s21 + $0x70] sm:$0xff] %vm2878_vm11, %v3127_v60 }
 0x2fa   : > { %v3117_v33 = vpop.permute.xlu0 %3116 }
 0x2fb   : > { %3122 = vst.msk [vmem:[%s4295_s21 + $0x28] sm:$0xff] %vm2916_vm1, %v3117_v33  ;;  %v3108_v13 = vpop.permute.xlu1 %3107 }
 0x2fc   : > { %v3111_v47 = vsel %vm3109_vm5, %v4469_v40, %v3108_v13 }
 0x2fd   : > { %3115 = vst.msk [vmem:[%s4295_s21 + $0x68] sm:$0xff] %vm2898_vm13, %v3111_v47 }
 0x2fe   : > { %v3166_v12 = vpop.permute.xlu0 %3165 }
 0x2ff   : > { %3171 = vst.msk [vmem:[%s4295_s21 + $0x38] sm:$0xff] %vm2878_vm11, %v3166_v12  ;;  %v3135_v15 = vpop.permute.xlu1 %3134 }
 0x300   : > { %3139 = vst.msk [vmem:[%s4295_s21 + $0x70] sm:$0xff] %vm2889_vm12, %v3135_v15 }
 0x302   : > { %v3174_v14 = vpop.permute.xlu0 %3173 }
 0x303   : > { %3179 = vst.msk [vmem:[%s4295_s21 + $0x38] sm:$0xff] %vm2889_vm12, %v3174_v14  ;;  %v3119_v0 = vpop.permute.xlu1 %3118 }
 0x304   : > { %3123 = vst.msk [vmem:[%s4295_s21 + $0x68] sm:$0xff] %vm2916_vm1, %v3119_v0 }
 0x306   : > { %v3184_v16 = vpop.permute.xlu0 %3183 }
 0x307   : > { %v3192_v19 = vsel %vm3191_vm8, %v3184_v16, %v3186_v59  ;;  %v3168_v20 = vpop.permute.xlu1 %3167 }
 0x308   : > { %3196 = vst.msk [vmem:[%s4295_s21 + $0x38] sm:$0xff] %vm2898_vm13, %v3192_v19 }
 0x309   : > { %3172 = vst.msk [vmem:[%s4295_s21 + $0x78] sm:$0xff] %vm2878_vm11, %v3168_v20 }
 0x30a   : > { %v3158_v17 = vpop.permute.xlu0 %3157 }
 0x30b   : > { %3163 = vst.msk [vmem:[%s4295_s21 + $0x30] sm:$0xff] %vm2916_vm1, %v3158_v17  ;;  %v3149_v22 = vpop.permute.xlu1 %3148 }
 0x30e   : > { %v3147_v21 = vpop.permute.xlu0 %3146 }
 0x30f   : > { %v3152_v25 = vsel %vm3150_vm7, %v3147_v21, %v3149_v22  ;;  %v3176_v27 = vpop.permute.xlu1 %3175 }
 0x310   : > { %3156 = vst.msk [vmem:[%s4295_s21 + $0x70] sm:$0xff] %vm2898_vm13, %v3152_v25 }
 0x311   : > { %3180 = vst.msk [vmem:[%s4295_s21 + $0x78] sm:$0xff] %vm2889_vm12, %v3176_v27 }
 0x312   : > { %v3188_v26 = vpop.permute.xlu0 %3187 }
 0x313   : > { %v3193_v18 = vsel %vm3191_vm8, %v3188_v26, %v3190_v5  ;;  %v3160_v28 = vpop.permute.xlu1 %3159 }
 0x314   : > { %3197 = vst.msk [vmem:[%s4295_s21 + $0x78] sm:$0xff] %vm2898_vm13, %v3193_v18 }
 0x315   : > { %3164 = vst.msk [vmem:[%s4295_s21 + $0x70] sm:$0xff] %vm2916_vm1, %v3160_v28 }
 0x316   : > { %v3199_v24 = vpop.permute.xlu0 %3198 }
 0x317   : > { %3204 = vst.msk [vmem:[%s4295_s21 + $0x38] sm:$0xff] %vm2916_vm1, %v3199_v24  ;;  %v3201_v29 = vpop.permute.xlu1 %3200 }
 0x318   : > { %3205 = vst.msk [vmem:[%s4295_s21 + $0x78] sm:$0xff] %vm2916_vm1, %v3201_v29 }
 0x319 PF: > { %s15_s18 = sadd.s32 1, %s3660_s18  }
 0x31a   : > { %p12_p4 = scmp.ge.s32.totalorder %s15_s18, 4  }
 0x31c   :  { %14 = sbr.rel (!%p12_p4) target bundleno = 1 (0x1), region = 81 }

</bundles_post_ra>
